<compile_context>
chip_gen: v6e
topology: v6e:2x2x1
jax: 0.10.0
libtpu: 0.0.40
codegen_flags: <defaults>
</compile_context>

<pallas_src>
import jax
import jax.numpy as jnp
from jax.experimental import pallas as pl
from jax.experimental.pallas import tpu as pltpu

n_embed = 384
head_size = 64


def _head_kernel(x_ref, w_ref, o_ref):
    Bb, T, C = x_ref.shape
    H = o_ref.shape[-1]

    x = x_ref[...]                                  # (Bb, T, C), native dtype
    w = w_ref[...]                                  # (C, 3H), columns [K | Q | V]

    # Fused QKV projection: one lane-dense N=3H matmul (accumulate in fp32).
    qkv = jnp.dot(x.reshape(Bb * T, C), w,
                  preferred_element_type=jnp.float32).reshape(Bb, T, 3 * H)

    # Slice K/Q/V; fold the 1/sqrt(C) scale into q right away (T*H elems, not T*T).
    k = qkv[:, :, 0:H].astype(x.dtype)
    q = (qkv[:, :, H:2 * H] * (jnp.float32(C) ** -0.5)).astype(x.dtype)
    v = qkv[:, :, 2 * H:3 * H].astype(x.dtype)

    # Attention logits: contract last dims directly (no explicit k.T relayout).
    wei = jnp.einsum('bqh,bkh->bqk', q, k,
                     preferred_element_type=jnp.float32)          # (Bb, T, T)

    # Causal (lower-triangular) mask; large finite negative is NaN-safe even if a
    # row were ever fully masked.
    row = jax.lax.broadcasted_iota(jnp.int32, (T, T), 0)
    col = jax.lax.broadcasted_iota(jnp.int32, (T, T), 1)
    wei = jnp.where(col <= row, wei, jnp.float32(-1e30))

    # Numerically-stable softmax with normalization deferred past the value
    # matmul: the reciprocal scales a (T, H) result instead of the (T, T) matrix.
    m = jnp.max(wei, axis=-1, keepdims=True)
    e = jnp.exp(wei - m)
    s = jnp.sum(e, axis=-1, keepdims=True)

    ev = jnp.einsum('bqk,bkh->bqh', e.astype(v.dtype), v,
                    preferred_element_type=jnp.float32)           # (Bb, T, H)
    out = ev * pl.reciprocal(s, approx=False)

    o_ref[...] = out.astype(o_ref.dtype)


def head_forward(x, wk, wq, wv, *, max_batch_block=8):
    """x: (B, T, C);  wk/wq/wv: (head_size, C) PyTorch nn.Linear weight layout."""
    B, T, C = x.shape
    H = wk.shape[0]

    # Fuse the three projection weights into a single pre-transposed (C, 3H)
    # matrix with columns [K | Q | V] so the kernel does one x @ W_qkv.
    w_qkv = jnp.concatenate([wk.T, wq.T, wv.T], axis=1).astype(x.dtype)

    # Batch several samples per grid step to amortize per-step overhead.
    # Bb<=8 with T<=256 keeps the working set (x block x2 buffers, weights,
    # (Bb,T,T) fp32 logits/exp temps) well under the default scoped-VMEM limit
    # on v5e/v6e/v7x, so no vmem_limit_bytes override is needed.
    Bb = next(d for d in (max_batch_block, 8, 4, 2, 1)
              if d <= max_batch_block and B % d == 0)

    return pl.pallas_call(
        _head_kernel,
        out_shape=jax.ShapeDtypeStruct((B, T, H), x.dtype),
        grid_spec=pltpu.PrefetchScalarGridSpec(
            num_scalar_prefetch=0,
            grid=(B // Bb,),
            in_specs=[
                pl.BlockSpec((Bb, T, C), lambda b: (b, 0, 0)),
                # Constant block index: the fused weight is fetched once and
                # revisited across grid steps.
                pl.BlockSpec((C, 3 * H), lambda b: (0, 0)),
            ],
            out_specs=pl.BlockSpec((Bb, T, H), lambda b: (b, 0, 0)),
        ),
        compiler_params=pltpu.CompilerParams(
            dimension_semantics=("parallel",),
        ),
    )(x, w_qkv)


def head_reference(x, wk, wq, wv):
    """Plain-JAX reference mirroring the PyTorch forward (eval mode)."""
    B, T, C = x.shape
    k = x @ wk.T
    q = x @ wq.T
    v = x @ wv.T
    wei = (q @ jnp.swapaxes(k, -2, -1)) * (C ** -0.5)
    mask = jnp.tril(jnp.ones((T, T), dtype=bool))
    wei = jnp.where(mask, wei, -jnp.inf)
    wei = jax.nn.softmax(wei, axis=-1)
    return wei @ v


if __name__ == "__main__":
    key = jax.random.PRNGKey(0)
    kx, kk, kq, kv = jax.random.split(key, 4)

    B, T = 2, 128  # small sequence; T <= block_size (256) as in the PyTorch module
    x = jax.random.normal(kx, (B, T, n_embed), dtype=jnp.float32)

    # deterministic init mimicking nn.Linear's uniform(-1/sqrt(fan_in), 1/sqrt(fan_in))
    bound = 1.0 / (n_embed ** 0.5)
    wk = jax.random.uniform(kk, (head_size, n_embed), jnp.float32, -bound, bound)
    wq = jax.random.uniform(kq, (head_size, n_embed), jnp.float32, -bound, bound)
    wv = jax.random.uniform(kv, (head_size, n_embed), jnp.float32, -bound, bound)

    out = head_forward(x, wk, wq, wv)
    out = jax.block_until_ready(out)

    ref = head_reference(x, wk, wq, wv)
    assert out.shape == (B, T, head_size)
    assert jnp.allclose(out, ref, atol=2e-4, rtol=2e-4)

    print("KERNEL_OK")
</pallas_src>

<mosaic_0001>
module attributes {stable_mosaic.version = 11 : i64} {
  func.func @_head_kernel(%arg0: i32, %arg1: memref<2x128x384xf32, #tpu.memory_space<vmem>>, %arg2: memref<384x192xf32, #tpu.memory_space<vmem>>, %arg3: memref<2x128x64xf32, #tpu.memory_space<vmem>>) attributes {dimension_semantics = [#tpu.dimension_semantics<parallel>], iteration_bounds = array<i64: 1>, scalar_prefetch = 0 : i64, scratch_operands = 0 : i64, tpu.core_type = #tpu.core_type<tc>, window_params = [{transform_indices = @transform_0, window_bounds = array<i64: 2, 128, 384>}, {pipeline_mode = #tpu.pipeline_mode<synchronous>, transform_indices = @transform_1, window_bounds = array<i64: 384, 192>}, {transform_indices = @transform_2, window_bounds = array<i64: 2, 128, 64>}]} {
    %c0 = arith.constant 0 : index
    %c0_0 = arith.constant 0 : index
    %c0_1 = arith.constant 0 : index
    %0 = vector.load %arg1[%c0, %c0_0, %c0_1] : memref<2x128x384xf32, #tpu.memory_space<vmem>>, vector<2x128x384xf32>
    %c0_2 = arith.constant 0 : index
    %c0_3 = arith.constant 0 : index
    %1 = vector.load %arg2[%c0_2, %c0_3] : memref<384x192xf32, #tpu.memory_space<vmem>>, vector<384x192xf32>
    %2 = vector.shape_cast %0 : vector<2x128x384xf32> to vector<256x384xf32>
    %cst = arith.constant dense<0.000000e+00> : vector<256x192xf32>
    %3 = tpu.matmul %2, %1, %cst {dimension_numbers = #tpu.dot_dimension_numbers<[1], [0], [0], [1], [0, 0, 1, 1], [], []>} : vector<256x384xf32>, vector<384x192xf32>, vector<256x192xf32> -> vector<256x192xf32>
    %4 = vector.shape_cast %3 : vector<256x192xf32> to vector<2x128x192xf32>
    %5 = vector.extract_strided_slice %4 {offsets = [0, 0, 0], sizes = [2, 128, 64], strides = [1, 1, 1]} : vector<2x128x192xf32> to vector<2x128x64xf32>
    %6 = vector.extract_strided_slice %4 {offsets = [0, 0, 64], sizes = [2, 128, 64], strides = [1, 1, 1]} : vector<2x128x192xf32> to vector<2x128x64xf32>
    %cst_4 = arith.constant 3.840000e+02 : f32
    %cst_5 = arith.constant -5.000000e-01 : f32
    %7 = math.powf %cst_4, %cst_5 : f32
    %8 = vector.broadcast %7 : f32 to vector<2x128x64xf32>
    %9 = arith.mulf %6, %8 : vector<2x128x64xf32>
    %10 = vector.extract_strided_slice %4 {offsets = [0, 0, 128], sizes = [2, 128, 64], strides = [1, 1, 1]} : vector<2x128x192xf32> to vector<2x128x64xf32>
    "tpu.trace_start"() <{level = 10 : i32, message = "bqh,bkh->bqk"}> : () -> ()
    %cst_6 = arith.constant dense<0.000000e+00> : vector<2x128x128xf32>
    %11 = tpu.matmul %9, %5, %cst_6 {dimension_numbers = #tpu.dot_dimension_numbers<[2], [2], [1], [1], [0, 0, 0, 1, 1, 1], [0], [0]>} : vector<2x128x64xf32>, vector<2x128x64xf32>, vector<2x128x128xf32> -> vector<2x128x128xf32>
    "tpu.trace_stop"() : () -> ()
    %12 = tpu.iota {dimensions = array<i32: 0>} : vector<128x128xi32>
    %13 = tpu.iota {dimensions = array<i32: 1>} : vector<128x128xi32>
    %14 = arith.cmpi sle, %13, %12 : vector<128x128xi32>
    %cst_7 = arith.constant -1.000000e+30 : f32
    %15 = vector.shape_cast %14 : vector<128x128xi1> to vector<1x128x128xi1>
    %16 = vector.broadcast %15 : vector<1x128x128xi1> to vector<2x128x128xi1>
    %17 = vector.broadcast %cst_7 : f32 to vector<2x128x128xf32>
    %18 = arith.select %16, %11, %17 : vector<2x128x128xi1>, vector<2x128x128xf32>
    %cst_8 = arith.constant dense<0xFF800000> : vector<2x128xf32>
    %19 = vector.multi_reduction <maximumf>, %18, %cst_8 [2] : vector<2x128x128xf32> to vector<2x128xf32>
    %20 = vector.shape_cast %19 : vector<2x128xf32> to vector<2x128x1xf32>
    %21 = vector.broadcast %20 : vector<2x128x1xf32> to vector<2x128x128xf32>
    %22 = arith.subf %18, %21 : vector<2x128x128xf32>
    %23 = math.exp %22 : vector<2x128x128xf32>
    %cst_9 = arith.constant dense<0.000000e+00> : vector<2x128xf32>
    %24 = vector.multi_reduction <add>, %23, %cst_9 [2] : vector<2x128x128xf32> to vector<2x128xf32>
    %25 = vector.shape_cast %24 : vector<2x128xf32> to vector<2x128x1xf32>
    "tpu.trace_start"() <{level = 10 : i32, message = "bqk,bkh->bqh"}> : () -> ()
    %cst_10 = arith.constant dense<0.000000e+00> : vector<2x128x64xf32>
    %26 = tpu.matmul %23, %10, %cst_10 {dimension_numbers = #tpu.dot_dimension_numbers<[2], [1], [1], [2], [0, 0, 0, 1, 1, 2], [0], [0]>} : vector<2x128x128xf32>, vector<2x128x64xf32>, vector<2x128x64xf32> -> vector<2x128x64xf32>
    "tpu.trace_stop"() : () -> ()
    %27 = tpu.reciprocal %25 : vector<2x128x1xf32> -> vector<2x128x1xf32>
    %28 = vector.broadcast %27 : vector<2x128x1xf32> to vector<2x128x64xf32>
    %29 = arith.mulf %26, %28 : vector<2x128x64xf32>
    %c0_11 = arith.constant 0 : index
    %c0_12 = arith.constant 0 : index
    %c0_13 = arith.constant 0 : index
    %30 = vector.load %arg3[%c0_11, %c0_12, %c0_13] : memref<2x128x64xf32, #tpu.memory_space<vmem>>, vector<2x128x64xf32>
    tpu.vector_store %arg3[%c0_11, %c0_12, %c0_13], %29 {strides = array<i32>} : memref<2x128x64xf32, #tpu.memory_space<vmem>>, vector<2x128x64xf32>,
    return
  }
  func.func @transform_0(%arg0: i32) -> (i32, i32, i32) {
    %c0_i32 = arith.constant 0 : i32
    %c0_i32_0 = arith.constant 0 : i32
    %c0_i32_1 = arith.constant 0 : i32
    return %arg0, %c0_i32, %c0_i32_0 : i32, i32, i32
  }
  func.func @transform_1(%arg0: i32) -> (i32, i32) {
    %c0_i32 = arith.constant 0 : i32
    %c0_i32_0 = arith.constant 0 : i32
    %c0_i32_1 = arith.constant 0 : i32
    return %c0_i32, %c0_i32_0 : i32, i32
  }
  func.func @transform_2(%arg0: i32) -> (i32, i32, i32) {
    %c0_i32 = arith.constant 0 : i32
    %c0_i32_0 = arith.constant 0 : i32
    %c0_i32_1 = arith.constant 0 : i32
    return %arg0, %c0_i32, %c0_i32_0 : i32, i32, i32
  }
}

</mosaic_0001>

<bundles_post_ra>
// kernel: tpu_custom_call.1
= control target key start
LH: loop header
LB: loop body
LE: loop exit
PB: predicated region body
PF: predicated region fallthrough
CT: control target
= control target key end

     0   :  { %v2587_v3 = vmov 0.0   ;;  %vm4043_vm0 = vcmask 523264   ;;  %s4040_s1 = inlined_call_operand.vmem [shape: f32[384,192], index: 1, kind: input, shape index: {}]   ;;  %s4041_s0 = inlined_call_operand.vmem [shape: f32[2,128,384], index: 0, kind: input, shape index: {}]   ;;  %s4042_s2 = inlined_call_operand.vmem [shape: f32[2,128,64], index: 2, kind: output, shape index: {}]  }
   0x1   :  { %v138_v0 = vld [vmem:[%s4040_s1 + $0xf8] sm:$0xff]  ;;  %v137_v1 = vld [vmem:[%s4040_s1 + $0xf0] sm:$0xff]  ;;  %v136_v2 = vld [vmem:[%s4040_s1 + $0xe8] sm:$0xff]  ;;  %524 = vmatprep.mubr.f32.mxu1 %v2587_v3 }
   0x2   :  { %203 = vmatprep.subr.mxu0 %v138_v0  ;;  %v135_v4 = vld [vmem:[%s4040_s1 + $0xe0] sm:$0xff]  ;;  %v134_v5 = vld [vmem:[%s4040_s1 + $0xd8] sm:$0xff]  ;;  %v133_v6 = vld [vmem:[%s4040_s1 + $0xd0] sm:$0xff] }
   0x3   :  { %204 = vmatpush1.msra.mxu0 %v137_v1  ;;  %v132_v7 = vld [vmem:[%s4040_s1 + $0xc8] sm:$0xff]  ;;  %v131_v8 = vld [vmem:[%s4040_s1 + $0xc0] sm:$0xff]  ;;  %v130_v9 = vld [vmem:[%s4040_s1 + $0xb8] sm:$0xff] }
   0x4   :  { %205 = vmatprep.subr.mxu0 %v136_v2  ;;  %v129_v10 = vld [vmem:[%s4040_s1 + $0xb0] sm:$0xff]  ;;  %v128_v11 = vld [vmem:[%s4040_s1 + $0xa8] sm:$0xff]  ;;  %v127_v12 = vld [vmem:[%s4040_s1 + $0xa0] sm:$0xff] }
   0x5   :  { %206 = vmatpush1.msra.mxu0 %v135_v4  ;;  %v126_v13 = vld [vmem:[%s4040_s1 + $0x98] sm:$0xff]  ;;  %v125_v15 = vld [vmem:[%s4040_s1 + $0x90] sm:$0xff]  ;;  %v200_v17 = vld [vmem:[%s4040_s1 + $0x2e8] sm:$0xff] }
   0x6   :  { %207 = vmatprep.subr.mxu0 %v134_v5  ;;  %v202_v14 = vld [vmem:[%s4040_s1 + $0x2f8] sm:$0xff]  ;;  %v201_v16 = vld [vmem:[%s4040_s1 + $0x2f0] sm:$0xff]  ;;  %v124_v18 = vld [vmem:[%s4040_s1 + $0x88] sm:$0xff] }
   0x7   :  { %208 = vmatpush1.msra.mxu0 %v133_v6  ;;  %460 = vmatprep.subr.mxu1 %v202_v14  ;;  %v199_v19 = vld [vmem:[%s4040_s1 + $0x2e0] sm:$0xff]  ;;  %v198_v21 = vld [vmem:[%s4040_s1 + $0x2d8] sm:$0xff]  ;;  %v197_v22 = vld [vmem:[%s4040_s1 + $0x2d0] sm:$0xff] }
   0x8   :  { %209 = vmatprep.subr.mxu0 %v132_v7  ;;  %461 = vmatpush1.msra.mxu1 %v201_v16  ;;  %v123_v20 = vld [vmem:[%s4040_s1 + $0x80] sm:$0xff]  ;;  %v122_v23 = vld [vmem:[%s4040_s1 + $0x78] sm:$0xff]  ;;  %v196_v24 = vld [vmem:[%s4040_s1 + $0x2c8] sm:$0xff] }
   0x9   :  { %210 = vmatpush1.msra.mxu0 %v131_v8  ;;  %462 = vmatprep.subr.mxu1 %v200_v17  ;;  %v121_v25 = vld [vmem:[%s4040_s1 + $0x70] sm:$0xff]  ;;  %v195_v26 = vld [vmem:[%s4040_s1 + $0x2c0] sm:$0xff]  ;;  %v120_v27 = vld [vmem:[%s4040_s1 + $0x68] sm:$0xff] }
   0xa   :  { %211 = vmatprep.subr.mxu0 %v130_v9  ;;  %463 = vmatpush1.msra.mxu1 %v199_v19  ;;  %v194_v28 = vld [vmem:[%s4040_s1 + $0x2b8] sm:$0xff]  ;;  %v119_v29 = vld [vmem:[%s4040_s1 + $0x60] sm:$0xff]  ;;  %v193_v30 = vld [vmem:[%s4040_s1 + $0x2b0] sm:$0xff] }
   0xb   :  { %212 = vmatpush1.msra.mxu0 %v129_v10  ;;  %464 = vmatprep.subr.mxu1 %v198_v21  ;;  %v118_v31 = vld [vmem:[%s4040_s1 + $0x58] sm:$0xff]  ;;  %v192_v32 = vld [vmem:[%s4040_s1 + $0x2a8] sm:$0xff]  ;;  %v117_v33 = vld [vmem:[%s4040_s1 + $0x50] sm:$0xff] }
   0xc   :  { %213 = vmatprep.subr.mxu0 %v128_v11  ;;  %465 = vmatpush1.msra.mxu1 %v197_v22  ;;  %v191_v34 = vld [vmem:[%s4040_s1 + $0x2a0] sm:$0xff]  ;;  %v116_v35 = vld [vmem:[%s4040_s1 + $0x48] sm:$0xff]  ;;  %v190_v36 = vld [vmem:[%s4040_s1 + $0x298] sm:$0xff] }
   0xd   :  { %214 = vmatpush1.msra.mxu0 %v127_v12  ;;  %466 = vmatprep.subr.mxu1 %v196_v24  ;;  %v115_v37 = vld [vmem:[%s4040_s1 + $0x40] sm:$0xff]  ;;  %v189_v38 = vld [vmem:[%s4040_s1 + $0x290] sm:$0xff]  ;;  %v114_v39 = vld [vmem:[%s4040_s1 + $0x38] sm:$0xff] }
   0xe   :  { %215 = vmatprep.subr.mxu0 %v126_v13  ;;  %467 = vmatpush1.msra.mxu1 %v195_v26  ;;  %v188_v40 = vld [vmem:[%s4040_s1 + $0x288] sm:$0xff]  ;;  %v113_v41 = vld [vmem:[%s4040_s1 + $0x30] sm:$0xff]  ;;  %v187_v42 = vld [vmem:[%s4040_s1 + $0x280] sm:$0xff] }
   0xf   :  { %216 = vmatpush1.msra.mxu0 %v125_v15  ;;  %468 = vmatprep.subr.mxu1 %v194_v28  ;;  %v112_v43 = vld [vmem:[%s4040_s1 + $0x28] sm:$0xff]  ;;  %v186_v44 = vld [vmem:[%s4040_s1 + $0x278] sm:$0xff]  ;;  %v111_v45 = vld [vmem:[%s4040_s1 + $0x20] sm:$0xff] }
  0x10   :  { %217 = vmatprep.subr.mxu0 %v124_v18  ;;  %469 = vmatpush1.msra.mxu1 %v193_v30  ;;  %v185_v46 = vld [vmem:[%s4040_s1 + $0x270] sm:$0xff]  ;;  %v110_v47 = vld [vmem:[%s4040_s1 + $0x18] sm:$0xff]  ;;  %v184_v48 = vld [vmem:[%s4040_s1 + $0x268] sm:$0xff] }
  0x11   :  { %218 = vmatpush1.msra.mxu0 %v123_v20  ;;  %470 = vmatprep.subr.mxu1 %v192_v32  ;;  %v109_v49 = vld [vmem:[%s4040_s1 + $0x10] sm:$0xff]  ;;  %v183_v50 = vld [vmem:[%s4040_s1 + $0x260] sm:$0xff]  ;;  %v108_v51 = vld [vmem:[%s4040_s1 + $0x8] sm:$0xff] }
  0x12   :  { %219 = vmatprep.subr.mxu0 %v122_v23  ;;  %471 = vmatpush1.msra.mxu1 %v191_v34  ;;  %v182_v52 = vld [vmem:[%s4040_s1 + $0x258] sm:$0xff]  ;;  %v107_v53 = vld [vmem:[%s4040_s1] sm:$0xff]  ;;  %v181_v54 = vld [vmem:[%s4040_s1 + $0x250] sm:$0xff] }
  0x13   :  { %220 = vmatpush1.msra.mxu0 %v121_v25  ;;  %472 = vmatprep.subr.mxu1 %v190_v36  ;;  %v170_v55 = vld [vmem:[%s4040_s1 + $0x1f8] sm:$0xff]  ;;  %v180_v56 = vld [vmem:[%s4040_s1 + $0x248] sm:$0xff]  ;;  %v169_v57 = vld [vmem:[%s4040_s1 + $0x1f0] sm:$0xff] }
  0x14   :  { %221 = vmatprep.subr.mxu0 %v120_v27  ;;  %473 = vmatpush1.msra.mxu1 %v189_v38  ;;  %v179_v58 = vld [vmem:[%s4040_s1 + $0x240] sm:$0xff]  ;;  %v168_v59 = vld [vmem:[%s4040_s1 + $0x1e8] sm:$0xff]  ;;  %v178_v60 = vld [vmem:[%s4040_s1 + $0x238] sm:$0xff] }
  0x15   :  { %222 = vmatpush1.msra.mxu0 %v119_v29  ;;  %474 = vmatprep.subr.mxu1 %v188_v40  ;;  %v167_v61 = vld [vmem:[%s4040_s1 + $0x1e0] sm:$0xff]  ;;  %v177_v62 = vld [vmem:[%s4040_s1 + $0x230] sm:$0xff]  ;;  %v166_v63 = vld [vmem:[%s4040_s1 + $0x1d8] sm:$0xff] }
  0x16   :  { %223 = vmatprep.subr.mxu0 %v118_v31  ;;  %475 = vmatpush1.msra.mxu1 %v187_v42  ;;  %v176_v0 = vld [vmem:[%s4040_s1 + $0x228] sm:$0xff]  ;;  %v165_v1 = vld [vmem:[%s4040_s1 + $0x1d0] sm:$0xff]  ;;  %v175_v2 = vld [vmem:[%s4040_s1 + $0x220] sm:$0xff] }
  0x17   :  { %224 = vmatpush1.msra.mxu0 %v117_v33  ;;  %476 = vmatprep.subr.mxu1 %v186_v44  ;;  %v164_v4 = vld [vmem:[%s4040_s1 + $0x1c8] sm:$0xff]  ;;  %v174_v5 = vld [vmem:[%s4040_s1 + $0x218] sm:$0xff]  ;;  %v163_v6 = vld [vmem:[%s4040_s1 + $0x1c0] sm:$0xff] }
  0x18   :  { %225 = vmatprep.subr.mxu0 %v116_v35  ;;  %477 = vmatpush1.msra.mxu1 %v185_v46  ;;  %v173_v7 = vld [vmem:[%s4040_s1 + $0x210] sm:$0xff]  ;;  %v162_v8 = vld [vmem:[%s4040_s1 + $0x1b8] sm:$0xff]  ;;  %v172_v9 = vld [vmem:[%s4040_s1 + $0x208] sm:$0xff] }
  0x19   :  { %226 = vmatpush1.msra.mxu0 %v115_v37  ;;  %478 = vmatprep.subr.mxu1 %v184_v48  ;;  %v161_v10 = vld [vmem:[%s4040_s1 + $0x1b0] sm:$0xff]  ;;  %v171_v11 = vld [vmem:[%s4040_s1 + $0x200] sm:$0xff]  ;;  %v160_v12 = vld [vmem:[%s4040_s1 + $0x1a8] sm:$0xff] }
  0x1a   :  { %227 = vmatprep.subr.mxu0 %v114_v39  ;;  %479 = vmatpush1.msra.mxu1 %v183_v50  ;;  %v13_v13 = vld [vmem:[%s4041_s0 + $0x10] sm:$0xff]  ;;  %v159_v14 = vld [vmem:[%s4040_s1 + $0x1a0] sm:$0xff]  ;;  %v12_v15 = vld [vmem:[%s4041_s0 + $0x8] sm:$0xff] }
  0x1b   :  { %228 = vmatpush1.msra.mxu0 %v113_v41  ;;  %480 = vmatprep.subr.mxu1 %v182_v52  ;;  %v158_v16 = vld [vmem:[%s4040_s1 + $0x198] sm:$0xff]  ;;  %v157_v17 = vld [vmem:[%s4040_s1 + $0x190] sm:$0xff]  ;;  %v156_v18 = vld [vmem:[%s4040_s1 + $0x188] sm:$0xff] }
  0x1c   :  { %229 = vmatprep.subr.mxu0 %v112_v43  ;;  %481 = vmatpush1.msra.mxu1 %v181_v54  ;;  %v16_v19 = vld [vmem:[%s4041_s0 + $0x28] sm:$0xff]  ;;  %v155_v20 = vld [vmem:[%s4040_s1 + $0x180] sm:$0xff]  ;;  %v154_v21 = vld [vmem:[%s4040_s1 + $0x178] sm:$0xff] }
  0x1d   :  { %230 = vmatpush1.msra.mxu0 %v111_v45  ;;  %482 = vmatprep.subr.mxu1 %v180_v56  ;;  %v153_v22 = vld [vmem:[%s4040_s1 + $0x170] sm:$0xff]  ;;  %v152_v23 = vld [vmem:[%s4040_s1 + $0x168] sm:$0xff]  ;;  %v19_v24 = vld [vmem:[%s4041_s0 + $0x40] sm:$0xff] }
  0x1e   :  { %231 = vmatprep.subr.mxu0 %v110_v47  ;;  %483 = vmatpush1.msra.mxu1 %v179_v58  ;;  %v151_v25 = vld [vmem:[%s4040_s1 + $0x160] sm:$0xff]  ;;  %v150_v26 = vld [vmem:[%s4040_s1 + $0x158] sm:$0xff]  ;;  %v149_v27 = vld [vmem:[%s4040_s1 + $0x150] sm:$0xff] }
  0x1f   :  { %232 = vmatpush1.msra.mxu0 %v109_v49  ;;  %484 = vmatprep.subr.mxu1 %v178_v60  ;;  %v148_v28 = vld [vmem:[%s4040_s1 + $0x148] sm:$0xff]  ;;  %v22_v29 = vld [vmem:[%s4041_s0 + $0x58] sm:$0xff]  ;;  %v147_v30 = vld [vmem:[%s4040_s1 + $0x140] sm:$0xff] }
  0x20   :  { %233 = vmatprep.subr.mxu0 %v108_v51  ;;  %485 = vmatpush1.msra.mxu1 %v177_v62  ;;  %v146_v31 = vld [vmem:[%s4040_s1 + $0x138] sm:$0xff]  ;;  %v145_v32 = vld [vmem:[%s4040_s1 + $0x130] sm:$0xff]  ;;  %v144_v33 = vld [vmem:[%s4040_s1 + $0x128] sm:$0xff] }
  0x21   :  { %234 = vmatpush1.msra.mxu0 %v107_v53  ;;  %486 = vmatprep.subr.mxu1 %v176_v0  ;;  %v25_v34 = vld [vmem:[%s4041_s0 + $0x70] sm:$0xff]  ;;  %v143_v35 = vld [vmem:[%s4040_s1 + $0x120] sm:$0xff]  ;;  %v142_v36 = vld [vmem:[%s4040_s1 + $0x118] sm:$0xff] }
  0x22   :  { %235 = vmatprep.subr.mxu0 %v170_v55  ;;  %487 = vmatpush1.msra.mxu1 %v175_v2  ;;  %v141_v37 = vld [vmem:[%s4040_s1 + $0x110] sm:$0xff]  ;;  %v140_v38 = vld [vmem:[%s4040_s1 + $0x108] sm:$0xff]  ;;  %v139_v40 = vld [vmem:[%s4040_s1 + $0x100] sm:$0xff] }
  0x23   :  { %236 = vmatpush2.msra.mxu0 %v169_v57  ;;  %488 = vmatprep.subr.mxu1 %v174_v5  ;;  %v28_v39 = vld [vmem:[%s4041_s0 + $0x88] sm:$0xff]  ;;  %v11_v41 = vld [vmem:[%s4041_s0] sm:$0xff]  ;;  %v14_v44 = vld [vmem:[%s4041_s0 + $0x18] sm:$0xff] }
  0x24   :  { %237 = vmatprep.subr.mxu0 %v168_v59  ;;  %489 = vmatpush1.msra.mxu1 %v173_v7  ;;  %v15_v42 = vld [vmem:[%s4041_s0 + $0x20] sm:$0xff]  ;;  %v18_v45 = vld [vmem:[%s4041_s0 + $0x38] sm:$0xff]  ;;  %v17_v47 = vld [vmem:[%s4041_s0 + $0x30] sm:$0xff] }
  0x25   :  { %238 = vmatpush2.msra.mxu0 %v167_v61  ;;  %490 = vmatprep.subr.mxu1 %v172_v9  ;;  %v31_v43 = vld [vmem:[%s4041_s0 + $0xa0] sm:$0xff]  ;;  %v34_v46 = vld [vmem:[%s4041_s0 + $0xb8] sm:$0xff]  ;;  %v21_v48 = vld [vmem:[%s4041_s0 + $0x50] sm:$0xff] }
  0x26   :  { %239 = vmatprep.subr.mxu0 %v166_v63  ;;  %491 = vmatpush1.msra.mxu1 %v171_v11  ;;  %v37_v49 = vld [vmem:[%s4041_s0 + $0xd0] sm:$0xff]  ;;  %v20_v50 = vld [vmem:[%s4041_s0 + $0x48] sm:$0xff]  ;;  %v23_v53 = vld [vmem:[%s4041_s0 + $0x60] sm:$0xff] }
  0x27   :  { %240 = vmatpush2.msra.mxu0 %v165_v1  ;;  %525 = vmatmul.mubr.f32.vlgmr.msra.gmra.mxu1 %v13_v13  ;;  %v24_v51 = vld [vmem:[%s4041_s0 + $0x68] sm:$0xff]  ;;  %v27_v54 = vld [vmem:[%s4041_s0 + $0x80] sm:$0xff]  ;;  %v26_v56 = vld [vmem:[%s4041_s0 + $0x78] sm:$0xff] }
  0x28   :  { %241 = vmatprep.subr.mxu0 %v164_v4  ;;  %267 = vmatprep.mubr.f32.mxu0 %v12_v15  ;;  %v40_v52 = vld [vmem:[%s4041_s0 + $0xe8] sm:$0xff]  ;;  %v43_v55 = vld [vmem:[%s4041_s0 + $0x100] sm:$0xff]  ;;  %v30_v57 = vld [vmem:[%s4041_s0 + $0x98] sm:$0xff] }
  0x29   :  { %242 = vmatpush2.msra.mxu0 %v163_v6  ;;  %530 = vmatprep.mubr.f32.mxu1 %v2587_v3  ;;  %v46_v58 = vld [vmem:[%s4041_s0 + $0x118] sm:$0xff]  ;;  %v29_v59 = vld [vmem:[%s4041_s0 + $0x90] sm:$0xff]  ;;  %v32_v62 = vld [vmem:[%s4041_s0 + $0xa8] sm:$0xff] }
  0x2a   :  { %243 = vmatprep.subr.mxu0 %v162_v8  ;;  %v33_v60 = vld [vmem:[%s4041_s0 + $0xb0] sm:$0xff]  ;;  %v36_v63 = vld [vmem:[%s4041_s0 + $0xc8] sm:$0xff]  ;;  %v35_v1 = vld [vmem:[%s4041_s0 + $0xc0] sm:$0xff] }
  0x2b   :  { %244 = vmatpush2.msra.mxu0 %v161_v10  ;;  %531 = vmatmul.mubr.f32.gmra.mxu1 %v16_v19  ;;  %v49_v61 = vld [vmem:[%s4041_s0 + $0x130] sm:$0xff]  ;;  %v52_v0 = vld [vmem:[%s4041_s0 + $0x148] sm:$0xff]  ;;  %v39_v2 = vld [vmem:[%s4041_s0 + $0xe0] sm:$0xff] }
  0x2c   :  { %245 = vmatprep.subr.mxu0 %v160_v12  ;;  %536 = vmatprep.mubr.f32.mxu1 %v2587_v3  ;;  %v55_v4 = vld [vmem:[%s4041_s0 + $0x160] sm:$0xff]  ;;  %v38_v5 = vld [vmem:[%s4041_s0 + $0xd8] sm:$0xff]  ;;  %v41_v8 = vld [vmem:[%s4041_s0 + $0xf0] sm:$0xff] }
  0x2d   :  { %246 = vmatpush2.msra.mxu0 %v159_v14  ;;  %v42_v6 = vld [vmem:[%s4041_s0 + $0xf8] sm:$0xff]  ;;  %v45_v9 = vld [vmem:[%s4041_s0 + $0x110] sm:$0xff]  ;;  %v44_v11 = vld [vmem:[%s4041_s0 + $0x108] sm:$0xff] }
  0x2e   :  { %247 = vmatprep.subr.mxu0 %v158_v16  ;;  %v58_v7 = vld [vmem:[%s4041_s0 + $0x178] sm:$0xff]  ;;  %v61_v10 = vld [vmem:[%s4041_s0 + $0x190] sm:$0xff]  ;;  %v48_v12 = vld [vmem:[%s4041_s0 + $0x128] sm:$0xff] }
  0x2f   :  { %248 = vmatpush2.msra.mxu0 %v157_v17  ;;  %537 = vmatmul.mubr.f32.gmra.mxu1 %v19_v24  ;;  %v64_v13 = vld [vmem:[%s4041_s0 + $0x1a8] sm:$0xff]  ;;  %v47_v14 = vld [vmem:[%s4041_s0 + $0x120] sm:$0xff]  ;;  %v50_v17 = vld [vmem:[%s4041_s0 + $0x138] sm:$0xff] }
  0x30   :  { %249 = vmatprep.subr.mxu0 %v156_v18  ;;  %542 = vmatprep.mubr.f32.mxu1 %v2587_v3  ;;  %v51_v15 = vld [vmem:[%s4041_s0 + $0x140] sm:$0xff]  ;;  %v54_v18 = vld [vmem:[%s4041_s0 + $0x158] sm:$0xff]  ;;  %v60_v24 = vld [vmem:[%s4041_s0 + $0x188] sm:$0xff] }
  0x31   :  { %250 = vmatpush2.msra.mxu0 %v155_v20  ;;  %v67_v16 = vld [vmem:[%s4041_s0 + $0x1c0] sm:$0xff]  ;;  %v70_v19 = vld [vmem:[%s4041_s0 + $0x1d8] sm:$0xff]  ;;  %v53_v20 = vld [vmem:[%s4041_s0 + $0x150] sm:$0xff] }
  0x32   :  { %251 = vmatprep.subr.mxu0 %v154_v21  ;;  %v57_v21 = vld [vmem:[%s4041_s0 + $0x170] sm:$0xff] }
  0x33   :  { %252 = vmatpush2.msra.mxu0 %v153_v22  ;;  %543 = vmatmul.mubr.f32.gmra.mxu1 %v22_v29  ;;  %v73_v22 = vld [vmem:[%s4041_s0 + $0x1f0] sm:$0xff]  ;;  %v62_v29 = vld [vmem:[%s4041_s0 + $0x198] sm:$0xff] }
  0x34   :  { %253 = vmatprep.subr.mxu0 %v152_v23  ;;  %548 = vmatprep.mubr.f32.mxu1 %v2587_v3  ;;  %v56_v23 = vld [vmem:[%s4041_s0 + $0x168] sm:$0xff] }
  0x35   :  { %254 = vmatpush2.msra.mxu0 %v151_v25  ;;  %v76_v25 = vld [vmem:[%s4041_s0 + $0x208] sm:$0xff] }
  0x36   :  { %255 = vmatprep.subr.mxu0 %v150_v26  ;;  %v59_v26 = vld [vmem:[%s4041_s0 + $0x180] sm:$0xff] }
  0x37   :  { %256 = vmatpush2.msra.mxu0 %v149_v27  ;;  %549 = vmatmul.mubr.f32.gmra.mxu1 %v25_v34  ;;  %v63_v27 = vld [vmem:[%s4041_s0 + $0x1a0] sm:$0xff]  ;;  %v85_v34 = vld [vmem:[%s4041_s0 + $0x250] sm:$0xff] }
  0x38   :  { %257 = vmatprep.subr.mxu0 %v148_v28  ;;  %554 = vmatprep.mubr.f32.mxu1 %v2587_v3  ;;  %v79_v28 = vld [vmem:[%s4041_s0 + $0x220] sm:$0xff] }
  0x39   :  { %258 = vmatpush2.msra.mxu0 %v147_v30  ;;  %v66_v30 = vld [vmem:[%s4041_s0 + $0x1b8] sm:$0xff] }
  0x3a   :  { %259 = vmatprep.subr.mxu0 %v146_v31  ;;  %v82_v31 = vld [vmem:[%s4041_s0 + $0x238] sm:$0xff] }
  0x3b   :  { %260 = vmatpush2.msra.mxu0 %v145_v32  ;;  %555 = vmatmul.mubr.f32.gmra.mxu1 %v28_v39  ;;  %v65_v32 = vld [vmem:[%s4041_s0 + $0x1b0] sm:$0xff]  ;;  %v75_v39 = vld [vmem:[%s4041_s0 + $0x200] sm:$0xff] }
  0x3c   :  { %261 = vmatprep.subr.mxu0 %v144_v33  ;;  %560 = vmatprep.mubr.f32.mxu1 %v2587_v3  ;;  %v69_v33 = vld [vmem:[%s4041_s0 + $0x1d0] sm:$0xff] }
  0x3d   :  { %262 = vmatpush2.msra.mxu0 %v143_v35  ;;  %v68_v35 = vld [vmem:[%s4041_s0 + $0x1c8] sm:$0xff] }
  0x3e   :  { %263 = vmatprep.subr.mxu0 %v142_v36  ;;  %v72_v36 = vld [vmem:[%s4041_s0 + $0x1e8] sm:$0xff] }
  0x3f   :  { %264 = vmatpush2.msra.mxu0 %v141_v37  ;;  %561 = vmatmul.mubr.f32.gmra.mxu1 %v31_v43  ;;  %v88_v37 = vld [vmem:[%s4041_s0 + $0x268] sm:$0xff]  ;;  %v94_v43 = vld [vmem:[%s4041_s0 + $0x298] sm:$0xff] }
  0x40   :  { %265 = vmatprep.subr.mxu0 %v140_v38  ;;  %566 = vmatprep.mubr.f32.mxu1 %v2587_v3  ;;  %v71_v38 = vld [vmem:[%s4041_s0 + $0x1e0] sm:$0xff] }
  0x41   :  { %266 = vmatpush2.msra.mxu0 %v139_v40  ;;  %v91_v40 = vld [vmem:[%s4041_s0 + $0x280] sm:$0xff] }
  0x42   :  { %268 = vmatmul.mubr.f32.vlgmr.msra.gmra.mxu0 %v11_v41  ;;  %v74_v41 = vld [vmem:[%s4041_s0 + $0x1f8] sm:$0xff] }
  0x43   :  { %273 = vmatprep.mubr.f32.mxu0 %v15_v42  ;;  %567 = vmatmul.mubr.f32.gmra.mxu1 %v34_v46  ;;  %v78_v42 = vld [vmem:[%s4041_s0 + $0x218] sm:$0xff]  ;;  %v97_v46 = vld [vmem:[%s4041_s0 + $0x2b0] sm:$0xff] }
  0x44   :  { %572 = vmatprep.mubr.f32.mxu1 %v2587_v3 }
  0x46   :  { %274 = vmatmul.mubr.f32.gmra.mxu0 %v14_v44  ;;  %v77_v44 = vld [vmem:[%s4041_s0 + $0x210] sm:$0xff] }
  0x47   :  { %279 = vmatprep.mubr.f32.mxu0 %v18_v45  ;;  %573 = vmatmul.mubr.f32.gmra.mxu1 %v37_v49  ;;  %v81_v45 = vld [vmem:[%s4041_s0 + $0x230] sm:$0xff]  ;;  %v100_v49 = vld [vmem:[%s4041_s0 + $0x2c8] sm:$0xff] }
  0x48   :  { %578 = vmatprep.mubr.f32.mxu1 %v2587_v3 }
  0x4a   :  { %280 = vmatmul.mubr.f32.gmra.mxu0 %v17_v47  ;;  %v80_v47 = vld [vmem:[%s4041_s0 + $0x228] sm:$0xff] }
  0x4b   :  { %285 = vmatprep.mubr.f32.mxu0 %v21_v48  ;;  %579 = vmatmul.mubr.f32.gmra.mxu1 %v40_v52  ;;  %v84_v48 = vld [vmem:[%s4041_s0 + $0x248] sm:$0xff]  ;;  %v103_v52 = vld [vmem:[%s4041_s0 + $0x2e0] sm:$0xff] }
  0x4c   :  { %584 = vmatprep.mubr.f32.mxu1 %v2587_v3 }
  0x4e   :  { %286 = vmatmul.mubr.f32.gmra.mxu0 %v20_v50  ;;  %v83_v50 = vld [vmem:[%s4041_s0 + $0x240] sm:$0xff] }
  0x4f   :  { %291 = vmatprep.mubr.f32.mxu0 %v24_v51  ;;  %585 = vmatmul.mubr.f32.gmra.mxu1 %v43_v55  ;;  %v87_v51 = vld [vmem:[%s4041_s0 + $0x260] sm:$0xff]  ;;  %v106_v55 = vld [vmem:[%s4041_s0 + $0x2f8] sm:$0xff] }
  0x50   :  { %590 = vmatprep.mubr.f32.mxu1 %v2587_v3 }
  0x52   :  { %292 = vmatmul.mubr.f32.gmra.mxu0 %v23_v53  ;;  %v86_v53 = vld [vmem:[%s4041_s0 + $0x258] sm:$0xff] }
  0x53   :  { %297 = vmatprep.mubr.f32.mxu0 %v27_v54  ;;  %591 = vmatmul.mubr.f32.gmra.mxu1 %v46_v58  ;;  %v90_v54 = vld [vmem:[%s4041_s0 + $0x278] sm:$0xff]  ;;  %v96_v58 = vld [vmem:[%s4041_s0 + $0x2a8] sm:$0xff] }
  0x54   :  { %596 = vmatprep.mubr.f32.mxu1 %v2587_v3 }
  0x56   :  { %298 = vmatmul.mubr.f32.gmra.mxu0 %v26_v56  ;;  %v89_v56 = vld [vmem:[%s4041_s0 + $0x270] sm:$0xff] }
  0x57   :  { %303 = vmatprep.mubr.f32.mxu0 %v30_v57  ;;  %597 = vmatmul.mubr.f32.gmra.mxu1 %v49_v61  ;;  %v93_v57 = vld [vmem:[%s4041_s0 + $0x290] sm:$0xff]  ;;  %v98_v61 = vld [vmem:[%s4041_s0 + $0x2b8] sm:$0xff] }
  0x58   :  { %602 = vmatprep.mubr.f32.mxu1 %v2587_v3 }
  0x5a   :  { %304 = vmatmul.mubr.f32.gmra.mxu0 %v29_v59  ;;  %v95_v59 = vld [vmem:[%s4041_s0 + $0x2a0] sm:$0xff] }
  0x5b   :  { %309 = vmatprep.mubr.f32.mxu0 %v33_v60  ;;  %603 = vmatmul.mubr.f32.gmra.mxu1 %v52_v0  ;;  %v99_v60 = vld [vmem:[%s4041_s0 + $0x2c0] sm:$0xff]  ;;  %v105_v0 = vld [vmem:[%s4041_s0 + $0x2f0] sm:$0xff] }
  0x5c   :  { %608 = vmatprep.mubr.f32.mxu1 %v2587_v3 }
  0x5e   :  { %310 = vmatmul.mubr.f32.gmra.mxu0 %v32_v62  ;;  %v102_v62 = vld [vmem:[%s4041_s0 + $0x2d8] sm:$0xff] }
  0x5f   :  { %315 = vmatprep.mubr.f32.mxu0 %v36_v63  ;;  %609 = vmatmul.mubr.f32.gmra.mxu1 %v55_v4  ;;  %v101_v63 = vld [vmem:[%s4041_s0 + $0x2d0] sm:$0xff] }
  0x60   :  { %614 = vmatprep.mubr.f32.mxu1 %v2587_v3 }
  0x62   :  { %316 = vmatmul.mubr.f32.gmra.mxu0 %v35_v1  ;;  %v104_v1 = vld [vmem:[%s4041_s0 + $0x2e8] sm:$0xff] }
  0x63   :  { %321 = vmatprep.mubr.f32.mxu0 %v39_v2  ;;  %615 = vmatmul.mubr.f32.gmra.mxu1 %v58_v7 }
  0x64   :  { %620 = vmatprep.mubr.f32.mxu1 %v2587_v3 }
  0x66   :  { %322 = vmatmul.mubr.f32.gmra.mxu0 %v38_v5 }
  0x67   :  { %327 = vmatprep.mubr.f32.mxu0 %v42_v6  ;;  %621 = vmatmul.mubr.f32.gmra.mxu1 %v61_v10 }
  0x68   :  { %626 = vmatprep.mubr.f32.mxu1 %v2587_v3 }
  0x6a   :  { %328 = vmatmul.mubr.f32.gmra.mxu0 %v41_v8 }
  0x6b   :  { %333 = vmatprep.mubr.f32.mxu0 %v45_v9  ;;  %627 = vmatmul.mubr.f32.gmra.mxu1 %v64_v13 }
  0x6c   :  { %632 = vmatprep.mubr.f32.mxu1 %v2587_v3 }
  0x6e   :  { %334 = vmatmul.mubr.f32.gmra.mxu0 %v44_v11 }
  0x6f   :  { %339 = vmatprep.mubr.f32.mxu0 %v48_v12  ;;  %633 = vmatmul.mubr.f32.gmra.mxu1 %v67_v16 }
  0x70   :  { %638 = vmatprep.mubr.f32.mxu1 %v2587_v3 }
  0x72   :  { %340 = vmatmul.mubr.f32.gmra.mxu0 %v47_v14 }
  0x73   :  { %345 = vmatprep.mubr.f32.mxu0 %v51_v15  ;;  %639 = vmatmul.mubr.f32.gmra.mxu1 %v70_v19 }
  0x74   :  { %644 = vmatprep.mubr.f32.mxu1 %v2587_v3 }
  0x76   :  { %346 = vmatmul.mubr.f32.gmra.mxu0 %v50_v17 }
  0x77   :  { %351 = vmatprep.mubr.f32.mxu0 %v54_v18  ;;  %645 = vmatmul.mubr.f32.gmra.mxu1 %v73_v22 }
  0x78   :  { %650 = vmatprep.mubr.f32.mxu1 %v2587_v3 }
  0x7a   :  { %352 = vmatmul.mubr.f32.gmra.mxu0 %v53_v20 }
  0x7b   :  { %357 = vmatprep.mubr.f32.mxu0 %v57_v21  ;;  %651 = vmatmul.mubr.f32.gmra.mxu1 %v76_v25 }
  0x7c   :  { %656 = vmatprep.mubr.f32.mxu1 %v2587_v3 }
  0x7e   :  { %358 = vmatmul.mubr.f32.gmra.mxu0 %v56_v23 }
  0x7f   :  { %363 = vmatprep.mubr.f32.mxu0 %v60_v24  ;;  %657 = vmatmul.mubr.f32.gmra.mxu1 %v79_v28 }
  0x80   :  { %662 = vmatprep.mubr.f32.mxu1 %v2587_v3 }
  0x82   :  { %364 = vmatmul.mubr.f32.gmra.mxu0 %v59_v26 }
  0x83   :  { %369 = vmatprep.mubr.f32.mxu0 %v63_v27  ;;  %663 = vmatmul.mubr.f32.gmra.mxu1 %v82_v31 }
  0x84   :  { %668 = vmatprep.mubr.f32.mxu1 %v2587_v3 }
  0x86   :  { %370 = vmatmul.mubr.f32.gmra.mxu0 %v62_v29 }
  0x87   :  { %375 = vmatprep.mubr.f32.mxu0 %v66_v30  ;;  %669 = vmatmul.mubr.f32.gmra.mxu1 %v85_v34 }
  0x88   :  { %674 = vmatprep.mubr.f32.mxu1 %v2587_v3 }
  0x8a   :  { %376 = vmatmul.mubr.f32.gmra.mxu0 %v65_v32 }
  0x8b   :  { %381 = vmatprep.mubr.f32.mxu0 %v69_v33  ;;  %675 = vmatmul.mubr.f32.gmra.mxu1 %v88_v37 }
  0x8c   :  { %680 = vmatprep.mubr.f32.mxu1 %v2587_v3 }
  0x8e   :  { %382 = vmatmul.mubr.f32.gmra.mxu0 %v68_v35 }
  0x8f   :  { %387 = vmatprep.mubr.f32.mxu0 %v72_v36  ;;  %681 = vmatmul.mubr.f32.gmra.mxu1 %v91_v40 }
  0x90   :  { %686 = vmatprep.mubr.f32.mxu1 %v2587_v3 }
  0x92   :  { %388 = vmatmul.mubr.f32.gmra.mxu0 %v71_v38 }
  0x93   :  { %393 = vmatprep.mubr.f32.mxu0 %v75_v39  ;;  %687 = vmatmul.mubr.f32.gmra.mxu1 %v94_v43 }
  0x94   :  { %692 = vmatprep.mubr.f32.mxu1 %v2587_v3 }
  0x96   :  { %394 = vmatmul.mubr.f32.gmra.mxu0 %v74_v41 }
  0x97   :  { %399 = vmatprep.mubr.f32.mxu0 %v78_v42  ;;  %693 = vmatmul.mubr.f32.gmra.mxu1 %v97_v46 }
  0x98   :  { %698 = vmatprep.mubr.f32.mxu1 %v2587_v3 }
  0x9a   :  { %400 = vmatmul.mubr.f32.gmra.mxu0 %v77_v44 }
  0x9b   :  { %405 = vmatprep.mubr.f32.mxu0 %v81_v45  ;;  %699 = vmatmul.mubr.f32.gmra.mxu1 %v100_v49 }
  0x9c   :  { %704 = vmatprep.mubr.f32.mxu1 %v2587_v3 }
  0x9e   :  { %406 = vmatmul.mubr.f32.gmra.mxu0 %v80_v47 }
  0x9f   :  { %411 = vmatprep.mubr.f32.mxu0 %v84_v48  ;;  %705 = vmatmul.mubr.f32.gmra.mxu1 %v103_v52 }
  0xa0   :  { %710 = vmatprep.mubr.f32.mxu1 %v2587_v3  ;;  %v92_v3 = vld [vmem:[%s4041_s0 + $0x288] sm:$0xff]  ;;  %s2588_s0 = smov 64  }
  0xa2   :  { %412 = vmatmul.mubr.f32.gmra.mxu0 %v83_v50 }
  0xa3   :  { %417 = vmatprep.mubr.f32.mxu0 %v87_v51  ;;  %711 = vmatmul.mubr.f32.gmra.mxu1 %v106_v55 }
  0xa6   :  { %418 = vmatmul.mubr.f32.gmra.mxu0 %v86_v53 }
  0xa7   :  { %423 = vmatprep.mubr.f32.mxu0 %v90_v54 }
  0xaa   :  { %424 = vmatmul.mubr.f32.gmra.mxu0 %v89_v56 }
  0xab   :  { %429 = vmatprep.mubr.f32.mxu0 %v93_v57 }
  0xae   :  { %430 = vmatmul.mubr.f32.gmra.mxu0 %v92_v3 }
  0xaf   :  { %435 = vmatprep.mubr.f32.mxu0 %v96_v58 }
  0xb2   :  { %436 = vmatmul.mubr.f32.gmra.mxu0 %v95_v59 }
  0xb3   :  { %441 = vmatprep.mubr.f32.mxu0 %v99_v60 }
  0xb6   :  { %442 = vmatmul.mubr.f32.gmra.mxu0 %v98_v61 }
  0xb7   :  { %447 = vmatprep.mubr.f32.mxu0 %v102_v62 }
  0xba   :  { %448 = vmatmul.mubr.f32.gmra.mxu0 %v101_v63 }
  0xbb   :  { %453 = vmatprep.mubr.f32.mxu0 %v105_v0 }
  0xbe   :  { %454 = vmatmul.mubr.f32.gmra.mxu0 %v104_v1 }
  0xe7   :  { %v526_v2 = vpop.f32.mrf.mxu1 }
  0xe9   :  { %v528_v4 = vpop.f32.mrf.mxu1 }
  0xeb   :  { %v532_v5 = vpop.f32.mrf.mxu1 }
  0xed   :  { %v534_v6 = vpop.f32.mrf.mxu1 }
  0xef   :  { %v538_v7 = vpop.f32.mrf.mxu1 }
  0xf1   :  { %v540_v8 = vpop.f32.mrf.mxu1 }
  0xf3   :  { %v544_v9 = vpop.f32.mrf.mxu1 }
  0xf5   :  { %v546_v10 = vpop.f32.mrf.mxu1 }
  0xf7   :  { %v550_v11 = vpop.f32.mrf.mxu1 }
  0xf9   :  { %v552_v12 = vpop.f32.mrf.mxu1 }
  0xfb   :  { %v556_v13 = vpop.f32.mrf.mxu1 }
  0xfd   :  { %v558_v15 = vpop.f32.mrf.mxu1 }
  0xff   :  { %v562_v18 = vpop.f32.mrf.mxu1 }
 0x101   :  { %v564_v22 = vpop.f32.mrf.mxu1 }
 0x102   :  { %v269_v14 = vpop.f32.mrf.mxu0 }
 0x103   :  { %v3212_v16 = vadd.f32 %v526_v2, %v269_v14  ;;  %v568_v25 = vpop.f32.mrf.mxu1 }
 0x104   :  { %v271_v17 = vpop.f32.mrf.mxu0 }
 0x105   :  { %v3214_v19 = vadd.f32 %v528_v4, %v271_v17  ;;  %v717_v20 = vmul.f32 0.05103104, %v3212_v16  ;;  %v570_v29 = vpop.f32.mrf.mxu1 }
 0x106   :  { %v275_v21 = vpop.f32.mrf.mxu0 }
 0x107   :  { %v3217_v23 = vadd.f32 %v532_v5, %v275_v21  ;;  %765 = vrot.lane.b32.xlu0 %v717_v20, %s2588_s0  ;;  %v574_v32 = vpop.f32.mrf.mxu1 }
 0x108   :  { %v277_v24 = vpop.f32.mrf.mxu0 }
 0x109   :  { %v3220_v26 = vadd.f32 %v534_v6, %v277_v24  ;;  %v718_v27 = vmul.f32 0.05103104, %v3217_v23  ;;  %v576_v36 = vpop.f32.mrf.mxu1 }
 0x10a   :  { %v281_v28 = vpop.f32.mrf.mxu0 }
 0x10b   :  { %v3223_v30 = vadd.f32 %v538_v7, %v281_v28  ;;  %767 = vrot.lane.b32.xlu0 %v718_v27, %s2588_s0  ;;  %v580_v39 = vpop.f32.mrf.mxu1 }
 0x10c   :  { %v283_v31 = vpop.f32.mrf.mxu0 }
 0x10d   :  { %v3226_v33 = vadd.f32 %v540_v8, %v283_v31  ;;  %v719_v34 = vmul.f32 0.05103104, %v3223_v30  ;;  %v582_v43 = vpop.f32.mrf.mxu1 }
 0x10e   :  { %v287_v35 = vpop.f32.mrf.mxu0 }
 0x10f   :  { %v3229_v37 = vadd.f32 %v544_v9, %v287_v35  ;;  %769 = vrot.lane.b32.xlu1 %v719_v34, %s2588_s0  ;;  %v586_v46 = vpop.f32.mrf.mxu1 }
 0x110   :  { %v289_v38 = vpop.f32.mrf.mxu0 }
 0x111   :  { %v3232_v40 = vadd.f32 %v546_v10, %v289_v38  ;;  %v720_v41 = vmul.f32 0.05103104, %v3229_v37  ;;  %v588_v50 = vpop.f32.mrf.mxu1 }
 0x112   :  { %v293_v42 = vpop.f32.mrf.mxu0 }
 0x113   :  { %v3235_v44 = vadd.f32 %v550_v11, %v293_v42  ;;  %771 = vrot.lane.b32.xlu1 %v720_v41, %s2588_s0  ;;  %v592_v53 = vpop.f32.mrf.mxu1 }
 0x114   :  { %v295_v45 = vpop.f32.mrf.mxu0 }
 0x115   :  { %v3238_v47 = vadd.f32 %v552_v12, %v295_v45  ;;  %v721_v48 = vmul.f32 0.05103104, %v3235_v44  ;;  %v594_v57 = vpop.f32.mrf.mxu1 }
 0x116   :  { %v299_v49 = vpop.f32.mrf.mxu0 }
 0x117   :  { %v3241_v51 = vadd.f32 %v556_v13, %v299_v49  ;;  %773 = vrot.lane.b32.xlu0 %v721_v48, %s2588_s0  ;;  %v598_v59 = vpop.f32.mrf.mxu1 }
 0x118   :  { %v301_v52 = vpop.f32.mrf.mxu0 }
 0x119   :  { %v3244_v54 = vadd.f32 %v558_v15, %v301_v52  ;;  %v722_v55 = vmul.f32 0.05103104, %v3241_v51  ;;  %v600_v63 = vpop.f32.mrf.mxu1 }
 0x11a   :  { %v305_v56 = vpop.f32.mrf.mxu0 }
 0x11b   :  { %v3247_v3 = vadd.f32 %v562_v18, %v305_v56  ;;  %775 = vrot.lane.b32.xlu1 %v722_v55, %s2588_s0  ;;  %v604_v2 = vpop.f32.mrf.mxu1 }
 0x11c   :  { %v307_v58 = vpop.f32.mrf.mxu0 }
 0x11d   :  { %v3250_v60 = vadd.f32 %v564_v22, %v307_v58  ;;  %v723_v61 = vmul.f32 0.05103104, %v3247_v3  ;;  %v606_v7 = vpop.f32.mrf.mxu1 }
 0x11e   :  { %v311_v62 = vpop.f32.mrf.mxu0 }
 0x11f   :  { %v3253_v0 = vadd.f32 %v568_v25, %v311_v62  ;;  %777 = vrot.lane.b32.xlu0 %v723_v61, %s2588_s0  ;;  %v610_v10 = vpop.f32.mrf.mxu1 }
 0x120   :  { %v313_v1 = vpop.f32.mrf.mxu0 }
 0x121   :  { %v3256_v4 = vadd.f32 %v570_v29, %v313_v1  ;;  %v724_v5 = vmul.f32 0.05103104, %v3253_v0  ;;  %v612_v14 = vpop.f32.mrf.mxu1 }
 0x122   :  { %v317_v6 = vpop.f32.mrf.mxu0 }
 0x123   :  { %v3259_v8 = vadd.f32 %v574_v32, %v317_v6  ;;  %779 = vrot.lane.b32.xlu1 %v724_v5, %s2588_s0  ;;  %v616_v18 = vpop.f32.mrf.mxu1 }
 0x124   :  { %v319_v9 = vpop.f32.mrf.mxu0 }
 0x125   :  { %v3262_v11 = vadd.f32 %v576_v36, %v319_v9  ;;  %v725_v12 = vmul.f32 0.05103104, %v3259_v8  ;;  %v3271_v24 = vpop.f32.mrf.mxu1 }
 0x126   :  { %v323_v13 = vpop.f32.mrf.mxu0 }
 0x127   :  { %v3265_v15 = vadd.f32 %v580_v39, %v323_v13  ;;  %781 = vrot.lane.b32.xlu0 %v725_v12, %s2588_s0  ;;  %v622_v28 = vpop.f32.mrf.mxu1 }
 0x128   :  { %v325_v17 = vpop.f32.mrf.mxu0 }
 0x129   :  { %v3268_v20 = vadd.f32 %v582_v43, %v325_v17  ;;  %v726_v21 = vmul.f32 0.05103104, %v3265_v15  ;;  %v624_v34 = vpop.f32.mrf.mxu1 }
 0x12a   :  { %v329_v22 = vpop.f32.mrf.mxu0 }
 0x12b   :  { %v3273_v25 = vadd.f32 %v586_v46, %v329_v22  ;;  %783 = vrot.lane.b32.xlu0 %v726_v21, %s2588_s0  ;;  %v628_v38 = vpop.f32.mrf.mxu1 }
 0x12c   :  { %v331_v27 = vpop.f32.mrf.mxu0 }
 0x12d   :  { %v3276_v29 = vadd.f32 %v588_v50, %v331_v27  ;;  %v727_v31 = vmul.f32 0.05103104, %v3273_v25  ;;  %v630_v43 = vpop.f32.mrf.mxu1 }
 0x12e   :  { %v335_v32 = vpop.f32.mrf.mxu0 }
 0x12f   :  { %v3279_v35 = vadd.f32 %v592_v53, %v335_v32  ;;  %785 = vrot.lane.b32.xlu0 %v727_v31, %s2588_s0  ;;  %v634_v48 = vpop.f32.mrf.mxu1 }
 0x130   :  { %v337_v36 = vpop.f32.mrf.mxu0 }
 0x131   :  { %v3282_v39 = vadd.f32 %v594_v57, %v337_v36  ;;  %v728_v41 = vmul.f32 0.05103104, %v3279_v35  ;;  %v636_v53 = vpop.f32.mrf.mxu1 }
 0x132   :  { %v341_v42 = vpop.f32.mrf.mxu0 }
 0x133   :  { %v599_v45 = vadd.f32 %v598_v59, %v341_v42  ;;  %787 = vrot.lane.b32.xlu0 %v728_v41, %s2588_s0  ;;  %v640_v57 = vpop.f32.mrf.mxu1 }
 0x134   :  { %v343_v46 = vpop.f32.mrf.mxu0 }
 0x135   :  { %v3286_v49 = vadd.f32 %v600_v63, %v343_v46  ;;  %v729_v50 = vmul.f32 0.05103104, %v599_v45  ;;  %v642_v1 = vpop.f32.mrf.mxu1 }
 0x136   :  { %v347_v52 = vpop.f32.mrf.mxu0 }
 0x137   :  { %v605_v55 = vadd.f32 %v604_v2, %v347_v52  ;;  %789 = vrot.lane.b32.xlu0 %v729_v50, %s2588_s0  ;;  %v646_v6 = vpop.f32.mrf.mxu1 }
 0x138   :  { %v349_v56 = vpop.f32.mrf.mxu0 }
 0x139   :  { %v3289_v58 = vadd.f32 %v606_v7, %v349_v56  ;;  %v730_v61 = vmul.f32 0.05103104, %v605_v55  ;;  %v648_v2 = vpop.f32.mrf.mxu1 }
 0x13a   :  { %v353_v62 = vpop.f32.mrf.mxu0 }
 0x13b   :  { %v611_v59 = vadd.f32 %v610_v10, %v353_v62  ;;  %791 = vrot.lane.b32.xlu0 %v730_v61, %s2588_s0  ;;  %v652_v7 = vpop.f32.mrf.mxu1 }
 0x13c   :  { %v355_v5 = vpop.f32.mrf.mxu0 }
 0x13d   :  { %v3292_v63 = vadd.f32 %v612_v14, %v355_v5  ;;  %v731_v9 = vmul.f32 0.05103104, %v611_v59  ;;  %v654_v22 = vpop.f32.mrf.mxu1 }
 0x13e   :  { %v359_v12 = vpop.f32.mrf.mxu0 }
 0x13f   :  { %v617_v13 = vadd.f32 %v616_v18, %v359_v12  ;;  %793 = vrot.lane.b32.xlu0 %v731_v9, %s2588_s0  ;;  %v658_v18 = vpop.f32.mrf.mxu1 }
 0x140   :  { %v3295_v17 = vpop.f32.mrf.mxu0 }
 0x141   :  { %2201 = vmatprep.subr.msk.mxu1 %vm4043_vm0, %v617_v13  ;;  %v732_v21 = vmul.f32 0.05103104, %v617_v13  ;;  %v660_v41 = vpop.f32.mrf.mxu1 }
 0x142   :  { %v365_v10 = vpop.f32.mrf.mxu0  ;;  %2202 = vmatpush3.xpose.msk.msra.mxu1 %vm4043_vm0, %v617_v13 }
 0x143   :  { %v3299_v27 = vadd.f32 %v622_v28, %v365_v10  ;;  %2203 = vmatprep.subr.msk.mxu1 %vm4043_vm0, %v611_v59  ;;  %795 = vrot.lane.b32.xlu0 %v732_v21, %s2588_s0  ;;  %v664_v46 = vpop.f32.mrf.mxu1 }
 0x144   :  { %v367_v14 = vpop.f32.mrf.mxu0 }
 0x145   :  { %v3303_v31 = vadd.f32 %v624_v34, %v367_v14  ;;  %v733_v32 = vmul.f32 0.05103104, %v3299_v27  ;;  %v666_v56 = vpop.f32.mrf.mxu1 }
 0x146   :  { %v371_v36 = vpop.f32.mrf.mxu0  ;;  %2204 = vmatpush3.xpose.msk.msra.mxu1 %vm4043_vm0, %v611_v59 }
 0x147   :  { %v3307_v42 = vadd.f32 %v628_v38, %v371_v36  ;;  %2205 = vmatprep.subr.msk.mxu1 %vm4043_vm0, %v605_v55  ;;  %1039 = vrot.lane.b32.xlu1 %v733_v32, %s2588_s0  ;;  %v670_v62 = vpop.f32.mrf.mxu1 }
 0x148   :  { %v373_v28 = vpop.f32.mrf.mxu0 }
 0x149   :  { %v3311_v50 = vadd.f32 %v630_v43, %v373_v28  ;;  %v734_v52 = vmul.f32 0.05103104, %v3307_v42  ;;  %v672_v9 = vpop.f32.mrf.mxu1 }
 0x14a   :  { %v377_v34 = vpop.f32.mrf.mxu0  ;;  %2206 = vmatpush3.xpose.msk.msra.mxu1 %vm4043_vm0, %v605_v55 }
 0x14b   :  { %v3315_v61 = vadd.f32 %v634_v48, %v377_v34  ;;  %2207 = vmatprep.subr.msk.mxu1 %vm4043_vm0, %v599_v45  ;;  %1041 = vrot.lane.b32.xlu1 %v734_v52, %s2588_s0  ;;  %v676_v55 = vpop.f32.mrf.mxu1 }
 0x14c   :  { %v379_v38 = vpop.f32.mrf.mxu0 }
 0x14d   :  { %v3319_v59 = vadd.f32 %v636_v53, %v379_v38  ;;  %v735_v5 = vmul.f32 0.05103104, %v3315_v61  ;;  %v678_v10 = vpop.f32.mrf.mxu1 }
 0x14e   :  { %v383_v43 = vpop.f32.mrf.mxu0  ;;  %2208 = vmatpush3.xpose.msk.msra.mxu1 %vm4043_vm0, %v599_v45 }
 0x14f   :  { %v3323_v12 = vadd.f32 %v640_v57, %v383_v43  ;;  %2209 = vmatprep.subr.msk.mxu1 %vm4043_vm0, %v3279_v35  ;;  %1043 = vrot.lane.b32.xlu1 %v735_v5, %s2588_s0  ;;  %v682_v36 = vpop.f32.mrf.mxu1 }
 0x150   :  { %v385_v48 = vpop.f32.mrf.mxu0 }
 0x151   :  { %v3328_v13 = vadd.f32 %v642_v1, %v385_v48  ;;  %v736_v53 = vmul.f32 0.05103104, %v3323_v12  ;;  %v684_v34 = vpop.f32.mrf.mxu1 }
 0x152   :  { %v389_v21 = vpop.f32.mrf.mxu0  ;;  %2210 = vmatpush3.xpose.msk.msra.mxu1 %vm4043_vm0, %v3279_v35 }
 0x153   :  { %v3333_v45 = vadd.f32 %v646_v6, %v389_v21  ;;  %2211 = vmatprep.subr.msk.mxu1 %vm4043_vm0, %v3273_v25  ;;  %1045 = vrot.lane.b32.xlu1 %v736_v53, %s2588_s0  ;;  %v688_v43 = vpop.f32.mrf.mxu1 }
 0x154   :  { %v391_v57 = vpop.f32.mrf.mxu0 }
 0x155   :  { %v3338_v14 = vadd.f32 %v648_v2, %v391_v57  ;;  %v737_v1 = vmul.f32 0.05103104, %v3333_v45  ;;  %v690_v21 = vpop.f32.mrf.mxu1 }
 0x156   :  { %v395_v32 = vpop.f32.mrf.mxu0  ;;  %2212 = vmatpush3.xpose.msk.msra.mxu1 %vm4043_vm0, %v3273_v25 }
 0x157   :  { %v3343_v28 = vadd.f32 %v652_v7, %v395_v32  ;;  %2213 = vmatprep.subr.msk.mxu1 %vm4043_vm0, %v3265_v15  ;;  %1047 = vrot.lane.b32.xlu1 %v737_v1, %s2588_s0  ;;  %v694_v32 = vpop.f32.mrf.mxu1 }
 0x158   :  { %v397_v35 = vpop.f32.mrf.mxu0 }
 0x159   :  { %v3348_v6 = vadd.f32 %v654_v22, %v397_v35  ;;  %v738_v2 = vmul.f32 0.05103104, %v3343_v28 }
 0x15a   :  { %v401_v52 = vpop.f32.mrf.mxu0  ;;  %2214 = vmatpush3.xpose.msk.msra.mxu1 %vm4043_vm0, %v3265_v15 }
 0x15b   :  { %v3353_v38 = vadd.f32 %v658_v18, %v401_v52  ;;  %2215 = vmatprep.subr.msk.mxu1 %vm4043_vm0, %v3259_v8  ;;  %1049 = vrot.lane.b32.xlu1 %v738_v2, %s2588_s0  ;;  %v696_v52 = vpop.f32.mrf.mxu1 }
 0x15c   :  { %v403_v25 = vpop.f32.mrf.mxu0 }
 0x15d   :  { %v3358_v7 = vadd.f32 %v660_v41, %v403_v25  ;;  %v739_v22 = vmul.f32 0.05103104, %v3353_v38 }
 0x15e   :  { %v407_v5 = vpop.f32.mrf.mxu0  ;;  %2216 = vmatpush3.xpose.msk.msra.mxu1 %vm4043_vm0, %v3259_v8 }
 0x15f   :  { %v3363_v48 = vadd.f32 %v664_v46, %v407_v5  ;;  %2217 = vmatprep.subr.msk.mxu1 %vm4043_vm0, %v3253_v0  ;;  %1051 = vrot.lane.b32.xlu1 %v739_v22, %s2588_s0  ;;  %v700_v5 = vpop.f32.mrf.mxu1 }
 0x160   :  { %v409_v15 = vpop.f32.mrf.mxu0 }
 0x161   :  { %v3368_v18 = vadd.f32 %v666_v56, %v409_v15  ;;  %v740_v41 = vmul.f32 0.05103104, %v3363_v48 }
 0x162   :  { %v413_v53 = vpop.f32.mrf.mxu0  ;;  %2218 = vmatpush3.xpose.msk.msra.mxu1 %vm4043_vm0, %v3253_v0 }
 0x163   :  { %v3373_v57 = vadd.f32 %v670_v62, %v413_v53  ;;  %2219 = vmatprep.subr.msk.mxu1 %vm4043_vm0, %v3247_v3  ;;  %1053 = vrot.lane.b32.xlu1 %v740_v41, %s2588_s0  ;;  %v702_v53 = vpop.f32.mrf.mxu1 }
 0x164   :  { %v415_v8 = vpop.f32.mrf.mxu0 }
 0x165   :  { %v3378_v46 = vadd.f32 %v672_v9, %v415_v8  ;;  %v741_v56 = vmul.f32 0.05103104, %v3373_v57 }
 0x166   :  { %v419_v1 = vpop.f32.mrf.mxu0  ;;  %2220 = vmatpush3.xpose.msk.msra.mxu1 %vm4043_vm0, %v3247_v3 }
 0x167   :  { %v3383_v35 = vadd.f32 %v676_v55, %v419_v1  ;;  %2221 = vmatprep.subr.msk.mxu1 %vm4043_vm0, %v3241_v51  ;;  %1055 = vrot.lane.b32.xlu0 %v741_v56, %s2588_s0  ;;  %v706_v1 = vpop.f32.mrf.mxu1 }
 0x168   :  { %v421_v0 = vpop.f32.mrf.mxu0 }
 0x169   :  { %v3388_v62 = vadd.f32 %v678_v10, %v421_v0  ;;  %v742_v9 = vmul.f32 0.05103104, %v3383_v35 }
 0x16a   :  { %v425_v2 = vpop.f32.mrf.mxu0  ;;  %2222 = vmatpush3.xpose.msk.msra.mxu1 %vm4043_vm0, %v3241_v51 }
 0x16b   :  { %v3393_v25 = vadd.f32 %v682_v36, %v425_v2  ;;  %2223 = vmatprep.subr.msk.mxu1 %vm4043_vm0, %v3235_v44  ;;  %1057 = vrot.lane.b32.xlu1 %v742_v9, %s2588_s0 }
 0x16c   :  { %v427_v3 = vpop.f32.mrf.mxu0 }
 0x16d   :  { %v3398_v55 = vadd.f32 %v684_v34, %v427_v3  ;;  %v743_v10 = vmul.f32 0.05103104, %v3393_v25  ;;  %v708_v3 = vpop.f32.mrf.mxu1 }
 0x16e   :  { %v431_v22 = vpop.f32.mrf.mxu0  ;;  %2224 = vmatpush3.xpose.msk.msra.mxu1 %vm4043_vm0, %v3235_v44 }
 0x16f   :  { %v3403_v15 = vadd.f32 %v688_v43, %v431_v22  ;;  %2225 = vmatprep.subr.msk.mxu1 %vm4043_vm0, %v3229_v37  ;;  %1059 = vrot.lane.b32.xlu0 %v743_v10, %s2588_s0  ;;  %v619_v22 = vadd.f32 %v3271_v24, %v3295_v17 }
 0x170   :  { %v433_v51 = vpop.f32.mrf.mxu0 }
 0x171   :  { %v3408_v36 = vadd.f32 %v690_v21, %v433_v51  ;;  %v744_v34 = vmul.f32 0.05103104, %v3403_v15 }
 0x172   :  { %v437_v41 = vpop.f32.mrf.mxu0  ;;  %2226 = vmatpush3.xpose.msk.msra.mxu1 %vm4043_vm0, %v3229_v37 }
 0x173   :  { %v3413_v8 = vadd.f32 %v694_v32, %v437_v41  ;;  %2227 = vmatprep.subr.msk.mxu1 %vm4043_vm0, %v3223_v30  ;;  %1061 = vrot.lane.b32.xlu1 %v744_v34, %s2588_s0  ;;  %v712_v34 = vpop.f32.mrf.mxu1 }
 0x174   :  { %v439_v44 = vpop.f32.mrf.mxu0 }
 0x175   :  { %v3418_v43 = vadd.f32 %v696_v52, %v439_v44  ;;  %v745_v21 = vmul.f32 0.05103104, %v3413_v8 }
 0x176   :  { %v443_v56 = vpop.f32.mrf.mxu0  ;;  %2228 = vmatpush3.xpose.msk.msra.mxu1 %vm4043_vm0, %v3223_v30 }
 0x177   :  { %v701_v0 = vadd.f32 %v700_v5, %v443_v56  ;;  %2229 = vmatprep.subr.msk.mxu1 %vm4043_vm0, %v3217_v23  ;;  %1063 = vrot.lane.b32.xlu0 %v745_v21, %s2588_s0 }
 0x178   :  { %v445_v37 = vpop.f32.mrf.mxu0 }
 0x179   :  { %v3426_v32 = vadd.f32 %v702_v53, %v445_v37  ;;  %v766_v9 = vpop.permute.xlu0 %765  ;;  %v746_v2 = vmul.f32 0.05103104, %v701_v0 }
 0x17a   :  { %v449_v52 = vpop.f32.mrf.mxu0  ;;  %2230 = vmatpush3.xpose.msk.msra.mxu1 %vm4043_vm0, %v3217_v23  ;;  %2233 = vmatprep.mubr.msk.f32.mxu1 %vm4043_vm0, %v766_v9 }
 0x17b   :  { %v707_v30 = vadd.f32 %v706_v1, %v449_v52  ;;  %2231 = vmatprep.subr.msk.mxu1 %vm4043_vm0, %v3212_v16  ;;  %1065 = vrot.lane.b32.xlu1 %v746_v2, %s2588_s0  ;;  %v1296_v1 = vlaneseq }
 0x17c   :  { %v451_v10 = vpop.f32.mrf.mxu0 }
 0x17d   :  { %v3436_v5 = vadd.f32 %v708_v3, %v451_v10  ;;  %v747_v51 = vmul.f32 0.05103104, %v707_v30  ;;  %v768_v53 = vpop.permute.xlu0 %767  ;;  %v3601_v9 = vand.u32 127, %v1296_v1 }
 0x17e   :  { %v455_v41 = vpop.f32.mrf.mxu0  ;;  %2232 = vmatpush3.xpose.msk.msra.mxu1 %vm4043_vm0, %v3212_v16 }
 0x17f   :  { %v713_v23 = vadd.f32 %v712_v34, %v455_v41  ;;  %2313 = vmatprep.subr.mxu1 %v619_v22  ;;  %1067 = vrot.lane.b32.xlu0 %v747_v51, %s2588_s0 }
 0x181   :  { %v770_v44 = vpop.permute.xlu1 %769  ;;  %2234 = vmatmul.mubr.msk.f32.vlgmr.msra.gmra.mxu1 %vm4043_vm0, %v768_v53  ;;  %2257 = vmatprep.subr.msk.mxu0 %vm4043_vm0, %v713_v23  ;;  %v748_v21 = vmul.f32 0.05103104, %v713_v23 }
 0x182   :  { %2236 = vmatprep.mubr.msk.f32.mxu1 %vm4043_vm0, %v770_v44  ;;  %2258 = vmatpush3.xpose.msk.msra.mxu0 %vm4043_vm0, %v713_v23 }
 0x183   :  { %2314 = vmatpush3.msra.mxu1 %v619_v22  ;;  %2259 = vmatprep.subr.msk.mxu0 %vm4043_vm0, %v707_v30 }
 0x184   :  { %2315 = vmatprep.subr.mxu1 %v3292_v63  ;;  %1069 = vrot.lane.b32.xlu1 %v748_v21, %s2588_s0 }
 0x185   :  { %2316 = vmatpush3.msra.mxu1 %v3292_v63  ;;  %v772_v16 = vpop.permute.xlu1 %771 }
 0x186   :  { %2317 = vmatprep.subr.mxu1 %v3289_v58  ;;  %2237 = vmatmul.mubr.msk.f32.gmra.mxu1 %vm4043_vm0, %v772_v16 }
 0x187   :  { %2260 = vmatpush3.xpose.msk.msra.mxu0 %vm4043_vm0, %v707_v30  ;;  %2318 = vmatpush3.msra.mxu1 %v3289_v58 }
 0x188   :  { %2261 = vmatprep.subr.msk.mxu0 %vm4043_vm0, %v701_v0  ;;  %2319 = vmatprep.subr.mxu1 %v3286_v49 }
 0x189   :  { %2320 = vmatpush3.msra.mxu1 %v3286_v49  ;;  %v774_v24 = vpop.permute.xlu0 %773 }
 0x18a   :  { %2321 = vmatprep.subr.mxu1 %v3282_v39  ;;  %2239 = vmatprep.mubr.msk.f32.mxu1 %vm4043_vm0, %v774_v24 }
 0x18b   :  { %2262 = vmatpush3.xpose.msk.msra.mxu0 %vm4043_vm0, %v701_v0  ;;  %2322 = vmatpush3.msra.mxu1 %v3282_v39  ;;  %v3596_v0 = vshrl.u32 %v1296_v1, 7 }
 0x18c   :  { %2263 = vmatprep.subr.msk.mxu0 %vm4043_vm0, %v3413_v8  ;;  %2323 = vmatprep.subr.mxu1 %v3276_v29 }
 0x18d   :  { %2324 = vmatpush3.msra.mxu1 %v3276_v29  ;;  %v776_v58 = vpop.permute.xlu1 %775  ;;  %v3599_v37 = vadd.s32 8, %v3596_v0  ;;  %v3606_v2 = vadd.s32 24, %v3596_v0  ;;  %vm1315_vm2 = vcmp.le.s32.totalorder %v3601_v9, %v3596_v0  ;;  %v3625_v22 = vadd.s32 16, %v3596_v0 }
 0x18e   :  { %2325 = vmatprep.subr.mxu1 %v3268_v20  ;;  %2240 = vmatmul.mubr.msk.f32.gmra.mxu1 %vm4043_vm0, %v776_v58  ;;  %v3633_v41 = vadd.s32 40, %v3596_v0  ;;  %v3639_v53 = vadd.s32 32, %v3596_v0  ;;  %v3657_v58 = vadd.s32 56, %v3596_v0 }
 0x18f   :  { %2264 = vmatpush3.xpose.msk.msra.mxu0 %vm4043_vm0, %v3413_v8  ;;  %2326 = vmatpush3.msra.mxu1 %v3268_v20  ;;  %vm1316_vm1 = vcmp.le.s32.totalorder %v3601_v9, %v3599_v37  ;;  %vm1318_vm3 = vcmp.le.s32.totalorder %v3601_v9, %v3606_v2  ;;  %vm1317_vm4 = vcmp.le.s32.totalorder %v3601_v9, %v3625_v22 }
 0x190   :  { %2265 = vmatprep.subr.msk.mxu0 %vm4043_vm0, %v3403_v15  ;;  %2327 = vmatprep.subr.mxu1 %v3262_v11  ;;  %vm1320_vm5 = vcmp.le.s32.totalorder %v3601_v9, %v3633_v41  ;;  %vm1319_vm6 = vcmp.le.s32.totalorder %v3601_v9, %v3639_v53  ;;  %vm1322_vm7 = vcmp.le.s32.totalorder %v3601_v9, %v3657_v58 }
 0x191   :  { %2328 = vmatpush3.msra.mxu1 %v3262_v11  ;;  %v778_v39 = vpop.permute.xlu0 %777 }
 0x192   :  { %2329 = vmatprep.subr.mxu1 %v3256_v4  ;;  %2242 = vmatprep.mubr.msk.f32.mxu1 %vm4043_vm0, %v778_v39 }
 0x193   :  { %2266 = vmatpush3.xpose.msk.msra.mxu0 %vm4043_vm0, %v3403_v15  ;;  %2330 = vmatpush3.msra.mxu1 %v3256_v4 }
 0x194   :  { %2267 = vmatprep.subr.msk.mxu0 %vm4043_vm0, %v3393_v25  ;;  %2331 = vmatprep.subr.mxu1 %v3250_v60 }
 0x195   :  { %2332 = vmatpush3.msra.mxu1 %v3250_v60  ;;  %v780_v20 = vpop.permute.xlu1 %779 }
 0x196   :  { %2333 = vmatprep.subr.mxu1 %v3244_v54  ;;  %2243 = vmatmul.mubr.msk.f32.gmra.mxu1 %vm4043_vm0, %v780_v20  ;;  %v3667_v20 = vadd.s32 48, %v3596_v0 }
 0x197   :  { %2268 = vmatpush3.xpose.msk.msra.mxu0 %vm4043_vm0, %v3393_v25  ;;  %2334 = vmatpush3.msra.mxu1 %v3244_v54  ;;  %v457_v54 = vpop.f32.mrf.mxu0 }
 0x198   :  { %2269 = vmatprep.subr.msk.mxu0 %vm4043_vm0, %v3383_v35  ;;  %2335 = vmatprep.subr.mxu1 %v3238_v47  ;;  %vm1321_vm8 = vcmp.le.s32.totalorder %v3601_v9, %v3667_v20 }
 0x199   :  { %2336 = vmatpush3.msra.mxu1 %v3238_v47  ;;  %v782_v4 = vpop.permute.xlu0 %781  ;;  %v714_v47 = vpop.f32.mrf.mxu1 }
 0x19a   :  { %2337 = vmatprep.subr.mxu1 %v3232_v40  ;;  %2245 = vmatprep.mubr.msk.f32.mxu1 %vm4043_vm0, %v782_v4 }
 0x19b   :  { %2270 = vmatpush3.xpose.msk.msra.mxu0 %vm4043_vm0, %v3383_v35  ;;  %2338 = vmatpush3.msra.mxu1 %v3232_v40  ;;  %v3505_v40 = vadd.f32 %v714_v47, %v457_v54  ;;  %v3680_v47 = vadd.s32 72, %v3596_v0 }
 0x19c   :  { %2271 = vmatprep.subr.msk.mxu0 %vm4043_vm0, %v3373_v57  ;;  %2339 = vmatprep.subr.mxu1 %v3226_v33 }
 0x19d   :  { %2340 = vmatpush3.msra.mxu1 %v3226_v33  ;;  %v784_v60 = vpop.permute.xlu0 %783  ;;  %vm1324_vm9 = vcmp.le.s32.totalorder %v3601_v9, %v3680_v47 }
 0x19e   :  { %2341 = vmatprep.subr.mxu1 %v3220_v26  ;;  %2246 = vmatmul.mubr.msk.f32.gmra.mxu1 %vm4043_vm0, %v784_v60 }
 0x19f   :  { %2272 = vmatpush3.xpose.msk.msra.mxu0 %vm4043_vm0, %v3373_v57  ;;  %2342 = vmatpush3.msra.mxu1 %v3220_v26 }
 0x1a0   :  { %2273 = vmatprep.subr.msk.mxu0 %vm4043_vm0, %v3363_v48  ;;  %2343 = vmatprep.subr.mxu1 %v3214_v19 }
 0x1a1   :  { %2344 = vmatpush3.msra.mxu1 %v3214_v19  ;;  %v786_v33 = vpop.permute.xlu0 %785 }
 0x1a2   :  { %2425 = vmatprep.subr.mxu1 %v3505_v40  ;;  %2248 = vmatprep.mubr.msk.f32.mxu1 %vm4043_vm0, %v786_v33 }
 0x1a3   :  { %2274 = vmatpush3.xpose.msk.msra.mxu0 %vm4043_vm0, %v3363_v48 }
 0x1a4   :  { %2275 = vmatprep.subr.msk.mxu0 %vm4043_vm0, %v3353_v38 }
 0x1a5   :  { %v788_v26 = vpop.permute.xlu0 %787 }
 0x1a6   :  { %2249 = vmatmul.mubr.msk.f32.gmra.mxu1 %vm4043_vm0, %v788_v26  ;;  %v3689_v26 = vadd.s32 64, %v3596_v0 }
 0x1a7   :  { %2276 = vmatpush3.xpose.msk.msra.mxu0 %vm4043_vm0, %v3353_v38 }
 0x1a8   :  { %2277 = vmatprep.subr.msk.mxu0 %vm4043_vm0, %v3343_v28  ;;  %vm1323_vm10 = vcmp.le.s32.totalorder %v3601_v9, %v3689_v26 }
 0x1a9   :  { %v790_v19 = vpop.permute.xlu0 %789 }
 0x1aa   :  { %2251 = vmatprep.mubr.msk.f32.mxu1 %vm4043_vm0, %v790_v19 }
 0x1ab   :  { %2278 = vmatpush3.xpose.msk.msra.mxu0 %vm4043_vm0, %v3343_v28 }
 0x1ac   :  { %2279 = vmatprep.subr.msk.mxu0 %vm4043_vm0, %v3333_v45 }
 0x1ad   :  { %v792_v11 = vpop.permute.xlu0 %791 }
 0x1ae   :  { %2252 = vmatmul.mubr.msk.f32.gmra.mxu1 %vm4043_vm0, %v792_v11 }
 0x1af   :  { %2280 = vmatpush3.xpose.msk.msra.mxu0 %vm4043_vm0, %v3333_v45 }
 0x1b0   :  { %2281 = vmatprep.subr.msk.mxu0 %vm4043_vm0, %v3323_v12 }
 0x1b1   :  { %v794_v29 = vpop.permute.xlu0 %793 }
 0x1b2   :  { %2254 = vmatprep.mubr.msk.f32.mxu1 %vm4043_vm0, %v794_v29 }
 0x1b3   :  { %2282 = vmatpush3.xpose.msk.msra.mxu0 %vm4043_vm0, %v3323_v12 }
 0x1b4   :  { %2283 = vmatprep.subr.msk.mxu0 %vm4043_vm0, %v3315_v61 }
 0x1b5   :  { %v796_v49 = vpop.permute.xlu0 %795 }
 0x1b6   :  { %2255 = vmatmul.mubr.msk.f32.gmra.mxu1 %vm4043_vm0, %v796_v49  ;;  %v3702_v49 = vadd.s32 88, %v3596_v0 }
 0x1b7   :  { %2284 = vmatpush3.xpose.msk.msra.mxu0 %vm4043_vm0, %v3315_v61 }
 0x1b8   :  { %2285 = vmatprep.subr.msk.mxu0 %vm4043_vm0, %v3307_v42  ;;  %vm1326_vm11 = vcmp.le.s32.totalorder %v3601_v9, %v3702_v49 }
 0x1b9   :  { %v1040_v63 = vpop.permute.xlu1 %1039 }
 0x1ba   :  { %2289 = vmatprep.mubr.msk.f32.mxu0 %vm4043_vm0, %v1040_v63 }
 0x1bb   :  { %2286 = vmatpush3.xpose.msk.msra.mxu0 %vm4043_vm0, %v3307_v42 }
 0x1bc   :  { %2287 = vmatprep.subr.msk.mxu0 %vm4043_vm0, %v3299_v27 }
 0x1bd   :  { %v1042_v17 = vpop.permute.xlu1 %1041 }
 0x1bf   :  { %2288 = vmatpush3.xpose.msk.msra.mxu0 %vm4043_vm0, %v3299_v27 }
 0x1c0   :  { %2369 = vmatprep.subr.mxu0 %v3505_v40 }
 0x1c1   :  { %v1044_v12 = vpop.permute.xlu1 %1043 }
 0x1c2   :  { %2290 = vmatmul.mubr.msk.f32.vlgmr.msra.gmra.mxu0 %vm4043_vm0, %v1042_v17  ;;  %v3711_v17 = vadd.s32 80, %v3596_v0 }
 0x1c3   :  { %2292 = vmatprep.mubr.msk.f32.mxu0 %vm4043_vm0, %v1044_v12  ;;  %2370 = vmatpush3.msra.mxu0 %v3505_v40 }
 0x1c4   :  { %2371 = vmatprep.subr.mxu0 %v3436_v5  ;;  %vm1325_vm12 = vcmp.le.s32.totalorder %v3601_v9, %v3711_v17 }
 0x1c5   :  { %2372 = vmatpush3.msra.mxu0 %v3436_v5  ;;  %v1046_v42 = vpop.permute.xlu1 %1045 }
 0x1c6   :  { %2373 = vmatprep.subr.mxu0 %v3426_v32  ;;  %2293 = vmatmul.mubr.msk.f32.gmra.mxu0 %vm4043_vm0, %v1046_v42 }
 0x1c7   :  { %2374 = vmatpush3.msra.mxu0 %v3426_v32 }
 0x1c8   :  { %2375 = vmatprep.subr.mxu0 %v3418_v43 }
 0x1c9   :  { %2376 = vmatpush3.msra.mxu0 %v3418_v43  ;;  %v1048_v27 = vpop.permute.xlu1 %1047 }
 0x1ca   :  { %2377 = vmatprep.subr.mxu0 %v3408_v36  ;;  %2295 = vmatprep.mubr.msk.f32.mxu0 %vm4043_vm0, %v1048_v27 }
 0x1cb   :  { %2378 = vmatpush3.msra.mxu0 %v3408_v36 }
 0x1cc   :  { %2379 = vmatprep.subr.mxu0 %v3398_v55 }
 0x1cd   :  { %2380 = vmatpush3.msra.mxu0 %v3398_v55  ;;  %v1050_v61 = vpop.permute.xlu1 %1049 }
 0x1ce   :  { %2381 = vmatprep.subr.mxu0 %v3388_v62  ;;  %2296 = vmatmul.mubr.msk.f32.gmra.mxu0 %vm4043_vm0, %v1050_v61  ;;  %v1310_v61 = vadd.s32 104, %v3596_v0 }
 0x1cf   :  { %2382 = vmatpush3.msra.mxu0 %v3388_v62 }
 0x1d0   :  { %2383 = vmatprep.subr.mxu0 %v3378_v46  ;;  %vm1328_vm13 = vcmp.le.s32.totalorder %v3601_v9, %v1310_v61 }
 0x1d1   :  { %2384 = vmatpush3.msra.mxu0 %v3378_v46  ;;  %v1052_v45 = vpop.permute.xlu1 %1051 }
 0x1d2   :  { %2385 = vmatprep.subr.mxu0 %v3368_v18  ;;  %2298 = vmatprep.mubr.msk.f32.mxu0 %vm4043_vm0, %v1052_v45 }
 0x1d3   :  { %2386 = vmatpush3.msra.mxu0 %v3368_v18 }
 0x1d4   :  { %2387 = vmatprep.subr.mxu0 %v3358_v7 }
 0x1d5   :  { %2388 = vmatpush3.msra.mxu0 %v3358_v7  ;;  %v1054_v28 = vpop.permute.xlu1 %1053 }
 0x1d6   :  { %2389 = vmatprep.subr.mxu0 %v3348_v6  ;;  %2299 = vmatmul.mubr.msk.f32.gmra.mxu0 %vm4043_vm0, %v1054_v28  ;;  %v1309_v28 = vadd.s32 96, %v3596_v0 }
 0x1d7   :  { %2390 = vmatpush3.msra.mxu0 %v3348_v6 }
 0x1d8   :  { %2391 = vmatprep.subr.mxu0 %v3338_v14  ;;  %vm1327_vm14 = vcmp.le.s32.totalorder %v3601_v9, %v1309_v28 }
 0x1d9   :  { %2392 = vmatpush3.msra.mxu0 %v3338_v14  ;;  %v1056_v38 = vpop.permute.xlu0 %1055 }
 0x1da   :  { %2393 = vmatprep.subr.mxu0 %v3328_v13  ;;  %2301 = vmatprep.mubr.msk.f32.mxu0 %vm4043_vm0, %v1056_v38 }
 0x1db   :  { %2394 = vmatpush3.msra.mxu0 %v3328_v13 }
 0x1dc   :  { %2395 = vmatprep.subr.mxu0 %v3319_v59 }
 0x1dd   :  { %2396 = vmatpush3.msra.mxu0 %v3319_v59  ;;  %v1058_v48 = vpop.permute.xlu1 %1057 }
 0x1de   :  { %2397 = vmatprep.subr.mxu0 %v3311_v50  ;;  %2302 = vmatmul.mubr.msk.f32.gmra.mxu0 %vm4043_vm0, %v1058_v48 }
 0x1df   :  { %2398 = vmatpush3.msra.mxu0 %v3311_v50 }
 0x1e0   :  { %2399 = vmatprep.subr.mxu0 %v3303_v31 }
 0x1e1   :  { %2400 = vmatpush3.msra.mxu0 %v3303_v31  ;;  %v1060_v57 = vpop.permute.xlu0 %1059 }
 0x1e2   :  { %2304 = vmatprep.mubr.msk.f32.mxu0 %vm4043_vm0, %v1060_v57 }
 0x1e5   :  { %v1062_v35 = vpop.permute.xlu1 %1061 }
 0x1e6   :  { %2305 = vmatmul.mubr.msk.f32.gmra.mxu0 %vm4043_vm0, %v1062_v35  ;;  %v1312_v35 = vadd.s32 120, %v3596_v0 }
 0x1e8   :  { %vm1330_vm15 = vcmp.le.s32.totalorder %v3601_v9, %v1312_v35 }
 0x1e9   :  { %v1064_v25 = vpop.permute.xlu0 %1063 }
 0x1ea   :  { %2307 = vmatprep.mubr.msk.f32.mxu0 %vm4043_vm0, %v1064_v25 }
 0x1ed   :  { %v1066_v15 = vpop.permute.xlu1 %1065 }
 0x1ee   :  { %2308 = vmatmul.mubr.msk.f32.gmra.mxu0 %vm4043_vm0, %v1066_v15  ;;  %v1311_v15 = vadd.s32 112, %v3596_v0 }
 0x1f1   :  { %v1068_v8 = vpop.permute.xlu0 %1067 }
 0x1f2   :  { %2310 = vmatprep.mubr.msk.f32.mxu0 %vm4043_vm0, %v1068_v8 }
 0x1f6   :  { %v1070_v56 = vpop.permute.xlu1 %1069 }
 0x1f7   :  { %2311 = vmatmul.mubr.msk.f32.gmra.mxu0 %vm4043_vm0, %v1070_v56  ;;  %vm1329_vm0 = vcmp.le.s32.totalorder %v3601_v9, %v1311_v15 }
 0x241   :  { %v2235_v52 = vpop.f32.mrf.mxu1 }
 0x242   :  { %v3613_v3 = vsel %vm1316_vm1, %v2235_v52, -1e+30 }
 0x243   :  { %v944_v30 = vpop.f32.mrf.mxu1  ;;  %1397 = vmax.xlane.f32.xlu1 %v3613_v3 }
 0x244   :  { %v3619_v10 = vsel %vm1315_vm2, %v944_v30, -1e+30 }
 0x245   :  { %1395 = vmax.xlane.f32.xlu0 %v3619_v10 }
 0x246   :  { %v2238_v51 = vpop.f32.mrf.mxu1 }
 0x247   :  { %v3630_v34 = vsel %vm1318_vm3, %v2238_v51, -1e+30 }
 0x248   :  { %v954_v23 = vpop.f32.mrf.mxu1 }
 0x249   :  { %1401 = vmax.xlane.f32.xlu0 %v3630_v34  ;;  %v3644_v44 = vsel %vm1317_vm4, %v954_v23, -1e+30 }
 0x24d   :  { %1399 = vmax.xlane.f32.xlu0 %v3644_v44 }
 0x24e   :  { %v2241_v21 = vpop.f32.mrf.mxu1 }
 0x24f   :  { %v3654_v16 = vsel %vm1320_vm5, %v2241_v21, -1e+30 }
 0x250   :  { %v964_v24 = vpop.f32.mrf.mxu1 }
 0x251   :  { %1405 = vmax.xlane.f32.xlu0 %v3654_v16  ;;  %v3663_v39 = vsel %vm1319_vm6, %v964_v24, -1e+30 }
 0x252   :  { %1403 = vmax.xlane.f32.xlu1 %v3663_v39 }
 0x256   :  { %v2244_v4 = vpop.f32.mrf.mxu1 }
 0x257   :  { %v3676_v54 = vsel %vm1322_vm7, %v2244_v4, -1e+30 }
 0x258   :  { %v974_v60 = vpop.f32.mrf.mxu1  ;;  %1409 = vmax.xlane.f32.xlu0 %v3676_v54 }
 0x259   :  { %v3685_v33 = vsel %vm1321_vm8, %v974_v60, -1e+30 }
 0x25a   :  { %1407 = vmax.xlane.f32.xlu1 %v3685_v33 }
 0x25e   :  { %v2247_v19 = vpop.f32.mrf.mxu1 }
 0x25f   :  { %v3698_v11 = vsel %vm1324_vm9, %v2247_v19, -1e+30 }
 0x260   :  { %v984_v29 = vpop.f32.mrf.mxu1  ;;  %1413 = vmax.xlane.f32.xlu0 %v3698_v11 }
 0x261   :  { %v3707_v63 = vsel %vm1323_vm10, %v984_v29, -1e+30 }
 0x262   :  { %1411 = vmax.xlane.f32.xlu1 %v3707_v63 }
 0x266   :  { %v2250_v12 = vpop.f32.mrf.mxu1 }
 0x267   :  { %v3720_v42 = vsel %vm1326_vm11, %v2250_v12, -1e+30 }
 0x268   :  { %v994_v27 = vpop.f32.mrf.mxu1  ;;  %1417 = vmax.xlane.f32.xlu0 %v3720_v42 }
 0x269   :  { %v3727_v45 = vsel %vm1325_vm12, %v994_v27, -1e+30 }
 0x26a   :  { %1415 = vmax.xlane.f32.xlu1 %v3727_v45 }
 0x26e   :  { %v2253_v38 = vpop.f32.mrf.mxu1 }
 0x26f   :  { %v3735_v48 = vsel %vm1328_vm13, %v2253_v38, -1e+30 }
 0x270   :  { %v1004_v57 = vpop.f32.mrf.mxu1  ;;  %1421 = vmax.xlane.f32.xlu0 %v3735_v48 }
 0x271   :  { %v3741_v25 = vsel %vm1327_vm14, %v1004_v57, -1e+30 }
 0x272   :  { %1419 = vmax.xlane.f32.xlu1 %v3741_v25 }
 0x276   :  { %v2256_v8 = vpop.f32.mrf.mxu1 }
 0x277   :  { %v3749_v56 = vsel %vm1330_vm15, %v2256_v8, -1e+30 }
 0x278   :  { %v1014_v1 = vpop.f32.mrf.mxu1  ;;  %1425 = vmax.xlane.f32.xlu0 %v3749_v56 }
 0x279   :  { %v3754_v52 = vsel %vm1329_vm0, %v1014_v1, -1e+30 }
 0x27a   :  { %1423 = vmax.xlane.f32.xlu1 %v3754_v52 }
 0x282   :  { %v2291_v30 = vpop.f32.mrf.mxu0 }
 0x283   :  { %v3760_v51 = vsel %vm1316_vm1, %v2291_v30, -1e+30 }
 0x284   :  { %1429 = vmax.xlane.f32.xlu1 %v3760_v51  ;;  %v1217_v23 = vpop.f32.mrf.mxu0 }
 0x285   :  { %v3766_v21 = vsel %vm1315_vm2, %v1217_v23, -1e+30 }
 0x286   :  { %v2294_v24 = vpop.f32.mrf.mxu0 }
 0x287   :  { %v3772_v4 = vsel %vm1318_vm3, %v2294_v24, -1e+30 }
 0x288   :  { %1427 = vmax.xlane.f32.xlu1 %v3766_v21  ;;  %v1227_v60 = vpop.f32.mrf.mxu0 }
 0x289   :  { %v3778_v37 = vsel %vm1317_vm4, %v1227_v60, -1e+30 }
 0x28c   :  { %1433 = vmax.xlane.f32.xlu1 %v3772_v4 }
 0x28e   :  { %v2297_v19 = vpop.f32.mrf.mxu0 }
 0x28f   :  { %v3784_v0 = vsel %vm1320_vm5, %v2297_v19, -1e+30 }
 0x290   :  { %1431 = vmax.xlane.f32.xlu1 %v3778_v37  ;;  %v1237_v29 = vpop.f32.mrf.mxu0 }
 0x291   :  { %v3790_v12 = vsel %vm1319_vm6, %v1237_v29, -1e+30 }
 0x294   :  { %1437 = vmax.xlane.f32.xlu1 %v3784_v0 }
 0x296   :  { %v2300_v2 = vpop.f32.mrf.mxu0 }
 0x297   :  { %v3802_v38 = vsel %vm1322_vm7, %v2300_v2, -1e+30 }
 0x298   :  { %1435 = vmax.xlane.f32.xlu1 %v3790_v12  ;;  %v1247_v22 = vpop.f32.mrf.mxu0 }
 0x299   :  { %v3796_v27 = vsel %vm1321_vm8, %v1247_v22, -1e+30 }
 0x29c   :  { %1439 = vmax.xlane.f32.xlu1 %v3796_v27 }
 0x29e   :  { %v2303_v41 = vpop.f32.mrf.mxu0 }
 0x29f   :  { %v3807_v53 = vsel %vm1324_vm9, %v2303_v41, -1e+30 }
 0x2a0   :  { %1441 = vmax.xlane.f32.xlu1 %v3802_v38  ;;  %1445 = vmax.xlane.f32.xlu0 %v3807_v53  ;;  %v1257_v20 = vpop.f32.mrf.mxu0 }
 0x2a1   :  { %v3814_v57 = vsel %vm1323_vm10, %v1257_v20, -1e+30 }
 0x2a4   :  { %1443 = vmax.xlane.f32.xlu0 %v3814_v57 }
 0x2a6   :  { %v2306_v58 = vpop.f32.mrf.mxu0 }
 0x2a7   :  { %v3820_v8 = vsel %vm1326_vm11, %v2306_v58, -1e+30 }
 0x2a8   :  { %1449 = vmax.xlane.f32.xlu0 %v3820_v8  ;;  %v1267_v47 = vpop.f32.mrf.mxu0 }
 0x2a9   :  { %v3826_v1 = vsel %vm1325_vm12, %v1267_v47, -1e+30 }
 0x2ac   :  { %1447 = vmax.xlane.f32.xlu0 %v3826_v1 }
 0x2ae   :  { %v2309_v26 = vpop.f32.mrf.mxu0 }
 0x2af   :  { %v3831_v30 = vsel %vm1328_vm13, %v2309_v26, -1e+30 }
 0x2b0   :  { %1453 = vmax.xlane.f32.xlu0 %v3831_v30  ;;  %v1277_v49 = vpop.f32.mrf.mxu0 }
 0x2b1   :  { %v3836_v23 = vsel %vm1327_vm14, %v1277_v49, -1e+30 }
 0x2b4   :  { %1451 = vmax.xlane.f32.xlu0 %v3836_v23 }
 0x2b7   :  { %v2312_v24 = vpop.f32.mrf.mxu0 }
 0x2b8   :  { %v3846_v61 = vsel %vm1330_vm15, %v2312_v24, -1e+30 }
 0x2b9   :  { %v1287_v17 = vpop.f32.mrf.mxu0 }
 0x2ba   :  { %v3841_v60 = vsel %vm1329_vm0, %v1287_v17, -1e+30  ;;  %vm4044_vm0 = vcmask 523264  }
 0x2bb   :  { %1455 = vmax.xlane.f32.xlu0 %v3841_v60  ;;  %vm4045_vm1 = vmmov %vm4044_vm0 }
 0x2bc   :  { %vm4046_vm2 = vmmov %vm4044_vm0 }
 0x2bd   :  { %vm4047_vm3 = vmmov %vm4044_vm0 }
 0x2be   :  { %vm4048_vm4 = vmmov %vm4044_vm0 }
 0x2bf   :  { %1457 = vmax.xlane.f32.xlu0 %v3846_v61  ;;  %vm4049_vm5 = vmmov %vm4044_vm0 }
 0x2c0   :  { %vm4050_vm6 = vmmov %vm4044_vm0 }
 0x2c1   :  { %vm4051_vm7 = vmmov %vm4044_vm0 }
 0x2c2   :  { %vm4052_vm8 = vmmov %vm4044_vm0 }
 0x2c3   :  { %vm4053_vm9 = vmmov %vm4044_vm0 }
 0x2c4   :  { %vm4054_vm10 = vmmov %vm4044_vm0 }
 0x2c5   :  { %vm4055_vm11 = vmmov %vm4044_vm0 }
 0x2c6   :  { %vm4056_vm12 = vmmov %vm4044_vm0 }
 0x2c7   :  { %vm4057_vm13 = vmmov %vm4044_vm0 }
 0x2c8   :  { %vm4058_vm14 = vmmov %vm4044_vm0 }
 0x2c9   :  { %vm4059_vm15 = vmmov %vm4044_vm0 }
 0x2cc   :  { %v1398_v19 = vpop.xlane.xlu1 %1397 }
 0x2cd   :  { %v1460_v28 = vsub.f32 %v3613_v3, %v1398_v19 }
 0x2ce   :  { %v1396_v29 = vpop.xlane.xlu0 %1395 }
 0x2cf   :  { %v1493_v2 = vmul.f32 1.442695, %v1460_v28  ;;  %v1459_v22 = vsub.f32 %v3619_v10, %v1396_v29 }
 0x2d1   :  { %2459 = vpow2.f32 %v1493_v2  ;;  %v1491_v41 = vmul.f32 1.442695, %v1459_v22 }
 0x2d2   :  { %v1402_v15 = vpop.xlane.xlu0 %1401 }
 0x2d3   :  { %2461 = vpow2.f32 %v1491_v41  ;;  %v1462_v20 = vsub.f32 %v3630_v34, %v1402_v15 }
 0x2d5   :  { %v1497_v58 = vmul.f32 1.442695, %v1462_v20 }
 0x2d6   :  { %v1400_v47 = vpop.xlane.xlu0 %1399 }
 0x2d7   :  { %2463 = vpow2.f32 %v1497_v58  ;;  %v1461_v9 = vsub.f32 %v3644_v44, %v1400_v47 }
 0x2d9   :  { %v1495_v35 = vmul.f32 1.442695, %v1461_v9 }
 0x2da   :  { %v1406_v26 = vpop.xlane.xlu0 %1405 }
 0x2db   :  { %2465 = vpow2.f32 %v1495_v35  ;;  %v1464_v3 = vsub.f32 %v3654_v16, %v1406_v26  ;;  %v1404_v49 = vpop.xlane.xlu1 %1403 }
 0x2dc   :  { %v1463_v24 = vsub.f32 %v3663_v39, %v1404_v49 }
 0x2dd   :  { %v1501_v10 = vmul.f32 1.442695, %v1464_v3 }
 0x2de   :  { %v2460_v17 = vpop.eup %2459  ;;  %v1499_v19 = vmul.f32 1.442695, %v1463_v24 }
 0x2df   :  { %2467 = vpow2.f32 %v1501_v10  ;;  %1557 = vadd.xlane.f32.xlu0 %v2460_v17 }
 0x2e0   :  { %v2462_v28 = vpop.eup %2461  ;;  %2469 = vpow2.f32 %v1499_v19 }
 0x2e1   :  { %2345 = vmatprep.mubr.f32.mxu1 %v2462_v28  ;;  %v1410_v34 = vpop.xlane.xlu0 %1409  ;;  %1555 = vadd.xlane.f32.xlu1 %v2462_v28 }
 0x2e2   :  { %v1466_v44 = vsub.f32 %v3676_v54, %v1410_v34  ;;  %2346 = vmatmul.mubr.f32.vlgmr.msra.gmra.mxu1 %v2460_v17 }
 0x2e3   :  { %2441 = vmatpush3.msra.mxu1 %v3505_v40  ;;  %v1408_v29 = vpop.xlane.xlu1 %1407 }
 0x2e4   :  { %v2464_v16 = vpop.eup %2463  ;;  %v1505_v2 = vmul.f32 1.442695, %v1466_v44  ;;  %v1465_v39 = vsub.f32 %v3685_v33, %v1408_v29  ;;  %2426 = vmatprep.subr.mxu1 %v3436_v5 }
 0x2e5   :  { %2442 = vmatpush3.msra.mxu1 %v3436_v5  ;;  %1561 = vadd.xlane.f32.xlu0 %v2464_v16 }
 0x2e6   :  { %2471 = vpow2.f32 %v1505_v2  ;;  %v1503_v22 = vmul.f32 1.442695, %v1465_v39  ;;  %2427 = vmatprep.subr.mxu1 %v3426_v32 }
 0x2e7   :  { %2443 = vmatpush3.msra.mxu1 %v3426_v32 }
 0x2e8   :  { %v2466_v54 = vpop.eup %2465  ;;  %2473 = vpow2.f32 %v1503_v22  ;;  %2428 = vmatprep.subr.mxu1 %v3418_v43 }
 0x2e9   :  { %2444 = vmatpush3.msra.mxu1 %v3418_v43  ;;  %v1414_v40 = vpop.xlane.xlu0 %1413  ;;  %2348 = vmatprep.mubr.f32.mxu1 %v2466_v54 }
 0x2ea   :  { %v1468_v33 = vsub.f32 %v3698_v11, %v1414_v40  ;;  %1559 = vadd.xlane.f32.xlu1 %v2466_v54  ;;  %2429 = vmatprep.subr.mxu1 %v3408_v36 }
 0x2eb   :  { %2349 = vmatmul.mubr.f32.gmra.mxu1 %v2464_v16  ;;  %v1412_v5 = vpop.xlane.xlu1 %1411 }
 0x2ec   :  { %v2468_v41 = vpop.eup %2467  ;;  %v1509_v15 = vmul.f32 1.442695, %v1468_v33  ;;  %2445 = vmatpush3.msra.mxu1 %v3408_v36  ;;  %v1467_v32 = vsub.f32 %v3707_v63, %v1412_v5 }
 0x2ed   :  { %v2470_v20 = vpop.eup %2469  ;;  %2430 = vmatprep.subr.mxu1 %v3398_v55  ;;  %1565 = vadd.xlane.f32.xlu0 %v2468_v41 }
 0x2ee   :  { %2475 = vpow2.f32 %v1509_v15  ;;  %v1507_v43 = vmul.f32 1.442695, %v1467_v32  ;;  %2446 = vmatpush3.msra.mxu1 %v3398_v55  ;;  %2351 = vmatprep.mubr.f32.mxu1 %v2470_v20 }
 0x2ef   :  { %2431 = vmatprep.subr.mxu1 %v3388_v62  ;;  %1563 = vadd.xlane.f32.xlu1 %v2470_v20 }
 0x2f0   :  { %2477 = vpow2.f32 %v1507_v43  ;;  %2447 = vmatpush3.msra.mxu1 %v3388_v62 }
 0x2f1   :  { %2352 = vmatmul.mubr.f32.gmra.mxu1 %v2468_v41  ;;  %2432 = vmatprep.subr.mxu1 %v3378_v46  ;;  %v1418_v36 = vpop.xlane.xlu0 %1417 }
 0x2f2   :  { %2448 = vmatpush3.msra.mxu1 %v3378_v46  ;;  %v1470_v11 = vsub.f32 %v3720_v42, %v1418_v36 }
 0x2f3   :  { %v2472_v63 = vpop.eup %2471  ;;  %2433 = vmatprep.subr.mxu1 %v3368_v18  ;;  %v1416_v58 = vpop.xlane.xlu1 %1415 }
 0x2f4   :  { %v1513_v55 = vmul.f32 1.442695, %v1470_v11  ;;  %2449 = vmatpush3.msra.mxu1 %v3368_v18  ;;  %v1469_v47 = vsub.f32 %v3727_v45, %v1416_v58  ;;  %1569 = vadd.xlane.f32.xlu0 %v2472_v63 }
 0x2f5   :  { %v2474_v9 = vpop.eup %2473  ;;  %2434 = vmatprep.subr.mxu1 %v3358_v7 }
 0x2f6   :  { %2479 = vpow2.f32 %v1513_v55  ;;  %v1511_v62 = vmul.f32 1.442695, %v1469_v47  ;;  %2450 = vmatpush3.msra.mxu1 %v3358_v7  ;;  %2354 = vmatprep.mubr.f32.mxu1 %v2474_v9 }
 0x2f7   :  { %2435 = vmatprep.subr.mxu1 %v3348_v6  ;;  %1567 = vadd.xlane.f32.xlu1 %v2474_v9 }
 0x2f8   :  { %2481 = vpow2.f32 %v1511_v62  ;;  %2451 = vmatpush3.msra.mxu1 %v3348_v6 }
 0x2f9   :  { %2355 = vmatmul.mubr.f32.gmra.mxu1 %v2472_v63  ;;  %2436 = vmatprep.subr.mxu1 %v3338_v14  ;;  %v1422_v18 = vpop.xlane.xlu0 %1421 }
 0x2fa   :  { %2452 = vmatpush3.msra.mxu1 %v3338_v14  ;;  %v1472_v46 = vsub.f32 %v3735_v48, %v1422_v18 }
 0x2fb   :  { %v2476_v42 = vpop.eup %2475  ;;  %2437 = vmatprep.subr.mxu1 %v3328_v13  ;;  %v1420_v45 = vpop.xlane.xlu1 %1419 }
 0x2fc   :  { %v1517_v7 = vmul.f32 1.442695, %v1472_v46  ;;  %2453 = vmatpush3.msra.mxu1 %v3328_v13  ;;  %v1471_v35 = vsub.f32 %v3741_v25, %v1420_v45  ;;  %1573 = vadd.xlane.f32.xlu0 %v2476_v42 }
 0x2fd   :  { %v2478_v26 = vpop.eup %2477  ;;  %2438 = vmatprep.subr.mxu1 %v3319_v59 }
 0x2fe   :  { %2483 = vpow2.f32 %v1517_v7  ;;  %v1515_v6 = vmul.f32 1.442695, %v1471_v35  ;;  %2454 = vmatpush3.msra.mxu1 %v3319_v59  ;;  %2357 = vmatprep.mubr.f32.mxu1 %v2478_v26 }
 0x2ff   :  { %2439 = vmatprep.subr.mxu1 %v3311_v50  ;;  %1571 = vadd.xlane.f32.xlu1 %v2478_v26 }
 0x300   :  { %2485 = vpow2.f32 %v1515_v6  ;;  %2455 = vmatpush3.msra.mxu1 %v3311_v50 }
 0x301   :  { %2358 = vmatmul.mubr.f32.gmra.mxu1 %v2476_v42  ;;  %2440 = vmatprep.subr.mxu1 %v3303_v31  ;;  %v1426_v13 = vpop.xlane.xlu0 %1425 }
 0x302   :  { %2456 = vmatpush3.msra.mxu1 %v3303_v31  ;;  %v1474_v14 = vsub.f32 %v3749_v56, %v1426_v13 }
 0x303   :  { %v2480_v48 = vpop.eup %2479  ;;  %v1424_v25 = vpop.xlane.xlu1 %1423 }
 0x304   :  { %v1521_v3 = vmul.f32 1.442695, %v1474_v14  ;;  %v1473_v59 = vsub.f32 %v3754_v52, %v1424_v25  ;;  %1577 = vadd.xlane.f32.xlu0 %v2480_v48 }
 0x305   :  { %v2482_v49 = vpop.eup %2481 }
 0x306   :  { %2487 = vpow2.f32 %v1521_v3  ;;  %v1519_v24 = vmul.f32 1.442695, %v1473_v59  ;;  %2360 = vmatprep.mubr.f32.mxu1 %v2482_v49  ;;  %1575 = vadd.xlane.f32.xlu1 %v2482_v49 }
 0x307   :  { %2361 = vmatmul.mubr.f32.gmra.mxu1 %v2480_v48 }
 0x308   :  { %2489 = vpow2.f32 %v1519_v24 }
 0x30b   :  { %v2484_v50 = vpop.eup %2483 }
 0x30c   :  { %1581 = vadd.xlane.f32.xlu0 %v2484_v50 }
 0x30d   :  { %v2486_v10 = vpop.eup %2485  ;;  %v1430_v17 = vpop.xlane.xlu1 %1429 }
 0x30e   :  { %v1476_v31 = vsub.f32 %v3760_v51, %v1430_v17  ;;  %2363 = vmatprep.mubr.f32.mxu1 %v2486_v10  ;;  %1579 = vadd.xlane.f32.xlu1 %v2486_v10 }
 0x30f   :  { %2364 = vmatmul.mubr.f32.gmra.mxu1 %v2484_v50 }
 0x310   :  { %v1525_v56 = vmul.f32 1.442695, %v1476_v31 }
 0x311   :  { %v1428_v19 = vpop.xlane.xlu1 %1427 }
 0x312   :  { %2491 = vpow2.f32 %v1525_v56  ;;  %v1475_v52 = vsub.f32 %v3766_v21, %v1428_v19 }
 0x313   :  { %v2488_v28 = vpop.eup %2487 }
 0x314   :  { %v1523_v34 = vmul.f32 1.442695, %v1475_v52  ;;  %1585 = vadd.xlane.f32.xlu0 %v2488_v28 }
 0x315   :  { %v2490_v44 = vpop.eup %2489  ;;  %v1434_v29 = vpop.xlane.xlu1 %1433 }
 0x316   :  { %2493 = vpow2.f32 %v1523_v34  ;;  %v1478_v16 = vsub.f32 %v3772_v4, %v1434_v29  ;;  %2366 = vmatprep.mubr.f32.mxu1 %v2490_v44  ;;  %1583 = vadd.xlane.f32.xlu1 %v2490_v44 }
 0x317   :  { %2367 = vmatmul.mubr.f32.gmra.mxu1 %v2488_v28 }
 0x318   :  { %v1529_v51 = vmul.f32 1.442695, %v1478_v16 }
 0x319   :  { %v1432_v2 = vpop.xlane.xlu1 %1431 }
 0x31a   :  { %2495 = vpow2.f32 %v1529_v51  ;;  %v1477_v39 = vsub.f32 %v3778_v37, %v1432_v2 }
 0x31c   :  { %v1527_v22 = vmul.f32 1.442695, %v1477_v39 }
 0x31d   :  { %v1438_v54 = vpop.xlane.xlu1 %1437 }
 0x31e   :  { %2497 = vpow2.f32 %v1527_v22  ;;  %v1480_v21 = vsub.f32 %v3784_v0, %v1438_v54 }
 0x31f   :  { %v2492_v40 = vpop.eup %2491 }
 0x320   :  { %v1533_v33 = vmul.f32 1.442695, %v1480_v21  ;;  %1589 = vadd.xlane.f32.xlu0 %v2492_v40 }
 0x321   :  { %v1436_v5 = vpop.xlane.xlu1 %1435 }
 0x322   :  { %2499 = vpow2.f32 %v1533_v33  ;;  %v1479_v4 = vsub.f32 %v3790_v12, %v1436_v5 }
 0x323   :  { %v2494_v41 = vpop.eup %2493 }
 0x324   :  { %v1531_v15 = vmul.f32 1.442695, %v1479_v4  ;;  %2401 = vmatprep.mubr.f32.mxu0 %v2494_v41  ;;  %1587 = vadd.xlane.f32.xlu1 %v2494_v41 }
 0x325   :  { %v1440_v32 = vpop.xlane.xlu1 %1439  ;;  %2402 = vmatmul.mubr.f32.vlgmr.msra.gmra.mxu0 %v2492_v40 }
 0x326   :  { %2501 = vpow2.f32 %v1531_v15  ;;  %v1481_v37 = vsub.f32 %v3796_v27, %v1440_v32 }
 0x327   :  { %v2496_v20 = vpop.eup %2495 }
 0x328   :  { %v1535_v43 = vmul.f32 1.442695, %v1481_v37  ;;  %1593 = vadd.xlane.f32.xlu0 %v2496_v20 }
 0x329   :  { %v1442_v0 = vpop.xlane.xlu1 %1441  ;;  %v1446_v36 = vpop.xlane.xlu0 %1445 }
 0x32a   :  { %2503 = vpow2.f32 %v1535_v43  ;;  %v1482_v11 = vsub.f32 %v3802_v38, %v1442_v0  ;;  %v1484_v63 = vsub.f32 %v3807_v53, %v1446_v36 }
 0x32b   :  { %v2498_v12 = vpop.eup %2497 }
 0x32c   :  { %v1537_v58 = vmul.f32 1.442695, %v1482_v11  ;;  %1591 = vadd.xlane.f32.xlu1 %v2498_v12  ;;  %2404 = vmatprep.mubr.f32.mxu0 %v2498_v12  ;;  %v1541_v55 = vmul.f32 1.442695, %v1484_v63 }
 0x32d   :  { %2405 = vmatmul.mubr.f32.gmra.mxu0 %v2496_v20  ;;  %v1444_v47 = vpop.xlane.xlu0 %1443 }
 0x32e   :  { %2505 = vpow2.f32 %v1537_v58  ;;  %v1483_v27 = vsub.f32 %v3814_v57, %v1444_v47 }
 0x32f   :  { %v2500_v9 = vpop.eup %2499  ;;  %2507 = vpow2.f32 %v1541_v55 }
 0x330   :  { %v1539_v62 = vmul.f32 1.442695, %v1483_v27  ;;  %1597 = vadd.xlane.f32.xlu0 %v2500_v9 }
 0x331   :  { %v1450_v18 = vpop.xlane.xlu0 %1449 }
 0x332   :  { %2509 = vpow2.f32 %v1539_v62  ;;  %v1486_v38 = vsub.f32 %v3820_v8, %v1450_v18 }
 0x333   :  { %v2502_v46 = vpop.eup %2501 }
 0x334   :  { %v1545_v53 = vmul.f32 1.442695, %v1486_v38  ;;  %1595 = vadd.xlane.f32.xlu1 %v2502_v46  ;;  %2407 = vmatprep.mubr.f32.mxu0 %v2502_v46 }
 0x335   :  { %2408 = vmatmul.mubr.f32.gmra.mxu0 %v2500_v9  ;;  %v1448_v42 = vpop.xlane.xlu0 %1447 }
 0x336   :  { %2511 = vpow2.f32 %v1545_v53  ;;  %v1485_v45 = vsub.f32 %v3826_v1, %v1448_v42 }
 0x337   :  { %v2504_v7 = vpop.eup %2503 }
 0x338   :  { %v1543_v35 = vmul.f32 1.442695, %v1485_v45  ;;  %1599 = vadd.xlane.f32.xlu1 %v2504_v7  ;;  %2410 = vmatprep.mubr.f32.mxu0 %v2504_v7 }
 0x339   :  { %v1454_v57 = vpop.xlane.xlu0 %1453 }
 0x33a   :  { %2513 = vpow2.f32 %v1543_v35  ;;  %v1488_v26 = vsub.f32 %v3831_v30, %v1454_v57 }
 0x33b   :  { %v2506_v6 = vpop.eup %2505 }
 0x33c   :  { %v1549_v13 = vmul.f32 1.442695, %v1488_v26  ;;  %1601 = vadd.xlane.f32.xlu0 %v2506_v6  ;;  %2411 = vmatmul.mubr.f32.gmra.mxu0 %v2506_v6  ;;  %v2508_v14 = vpop.eup %2507 }
 0x33d   :  { %v1452_v8 = vpop.xlane.xlu0 %1451 }
 0x33e   :  { %2515 = vpow2.f32 %v1549_v13  ;;  %v1487_v48 = vsub.f32 %v3836_v23, %v1452_v8 }
 0x33f   :  { %v2510_v25 = vpop.eup %2509 }
 0x340   :  { %v1547_v3 = vmul.f32 1.442695, %v1487_v48  ;;  %1605 = vadd.xlane.f32.xlu0 %v2508_v14  ;;  %1603 = vadd.xlane.f32.xlu1 %v2510_v25 }
 0x341   :  { %2413 = vmatprep.mubr.f32.mxu1 %v2510_v25 }
 0x342   :  { %2517 = vpow2.f32 %v1547_v3  ;;  %2414 = vmatmul.mubr.f32.vlgmr.msra.gmra.mxu1 %v2508_v14 }
 0x343   :  { %v2512_v1 = vpop.eup %2511 }
 0x344   :  { %v1456_v59 = vpop.xlane.xlu0 %1455  ;;  %1609 = vadd.xlane.f32.xlu0 %v2512_v1 }
 0x345   :  { %v1489_v30 = vsub.f32 %v3841_v60, %v1456_v59 }
 0x347   :  { %v2514_v49 = vpop.eup %2513  ;;  %v1551_v24 = vmul.f32 1.442695, %v1489_v30 }
 0x348   :  { %v1458_v50 = vpop.xlane.xlu0 %1457  ;;  %1607 = vadd.xlane.f32.xlu1 %v2514_v49  ;;  %2416 = vmatprep.mubr.f32.mxu1 %v2514_v49 }
 0x349   :  { %2519 = vpow2.f32 %v1551_v24  ;;  %v1490_v23 = vsub.f32 %v3846_v61, %v1458_v50  ;;  %2417 = vmatmul.mubr.f32.gmra.mxu1 %v2512_v1 }
 0x34b   :  { %v2516_v10 = vpop.eup %2515  ;;  %v1553_v17 = vmul.f32 1.442695, %v1490_v23 }
 0x34c   :  { %1613 = vadd.xlane.f32.xlu0 %v2516_v10 }
 0x34d   :  { %2521 = vpow2.f32 %v1553_v17 }
 0x34f   :  { %v2518_v31 = vpop.eup %2517 }
 0x350   :  { %1611 = vadd.xlane.f32.xlu1 %v2518_v31  ;;  %2419 = vmatprep.mubr.f32.mxu1 %v2518_v31 }
 0x351   :  { %2420 = vmatmul.mubr.f32.gmra.mxu1 %v2516_v10 }
 0x356   :  { %v2520_v56 = vpop.eup %2519 }
 0x357   :  { %1615 = vadd.xlane.f32.xlu1 %v2520_v56  ;;  %2422 = vmatprep.mubr.f32.mxu1 %v2520_v56 }
 0x35a   :  { %v2522_v60 = vpop.eup %2521 }
 0x35b   :  { %1617 = vadd.xlane.f32.xlu0 %v2522_v60  ;;  %2423 = vmatmul.mubr.f32.gmra.mxu1 %v2522_v60 }
 0x368   :  { %v1558_v19 = vpop.xlane.xlu0 %1557 }
 0x369   :  { %2523 = vrcp.f32 %v1558_v19 }
 0x36a   :  { %v1556_v52 = vpop.xlane.xlu1 %1555 }
 0x36b   :  { %2525 = vrcp.f32 %v1556_v52 }
 0x36e   :  { %v1562_v61 = vpop.xlane.xlu0 %1561 }
 0x36f   :  { %2527 = vrcp.f32 %v1562_v61 }
 0x373   :  { %v1560_v28 = vpop.xlane.xlu1 %1559 }
 0x374   :  { %2529 = vrcp.f32 %v1560_v28 }
 0x376   :  { %v1566_v34 = vpop.xlane.xlu0 %1565  ;;  %v2524_v44 = vpop.eup %2523 }
 0x377   :  { %2531 = vrcp.f32 %v1566_v34 }
 0x378   :  { %v1564_v16 = vpop.xlane.xlu1 %1563  ;;  %v2526_v2 = vpop.eup %2525 }
 0x379   :  { %2533 = vrcp.f32 %v1564_v16 }
 0x37c   :  { %v2528_v21 = vpop.eup %2527 }
 0x37d   :  { %v1570_v54 = vpop.xlane.xlu0 %1569 }
 0x37e   :  { %2535 = vrcp.f32 %v1570_v54 }
 0x380   :  { %v1568_v40 = vpop.xlane.xlu1 %1567 }
 0x381   :  { %v2530_v4 = vpop.eup %2529  ;;  %2537 = vrcp.f32 %v1568_v40 }
 0x384   :  { %v2532_v32 = vpop.eup %2531 }
 0x385   :  { %v1574_v37 = vpop.xlane.xlu0 %1573 }
 0x386   :  { %v2534_v0 = vpop.eup %2533  ;;  %2539 = vrcp.f32 %v1574_v37 }
 0x388   :  { %v1572_v36 = vpop.xlane.xlu1 %1571 }
 0x389   :  { %2541 = vrcp.f32 %v1572_v36 }
 0x38b   :  { %v2536_v58 = vpop.eup %2535 }
 0x38d   :  { %v1578_v12 = vpop.xlane.xlu0 %1577 }
 0x38e   :  { %2543 = vrcp.f32 %v1578_v12  ;;  %v2538_v9 = vpop.eup %2537 }
 0x38f   :  { %v1576_v55 = vpop.xlane.xlu1 %1575 }
 0x390   :  { %2545 = vrcp.f32 %v1576_v55 }
 0x393   :  { %v2540_v46 = vpop.eup %2539 }
 0x395   :  { %v1582_v38 = vpop.xlane.xlu0 %1581 }
 0x396   :  { %2547 = vrcp.f32 %v1582_v38  ;;  %v2542_v7 = vpop.eup %2541 }
 0x397   :  { %v1580_v53 = vpop.xlane.xlu1 %1579 }
 0x398   :  { %2549 = vrcp.f32 %v1580_v53 }
 0x39b   :  { %v2544_v26 = vpop.eup %2543 }
 0x39d   :  { %v1586_v6 = vpop.xlane.xlu0 %1585  ;;  %v2546_v14 = vpop.eup %2545 }
 0x39e   :  { %2551 = vrcp.f32 %v1586_v6 }
 0x39f   :  { %v1584_v48 = vpop.xlane.xlu1 %1583 }
 0x3a0   :  { %2553 = vrcp.f32 %v1584_v48 }
 0x3a2   :  { %v2347_v29 = vpop.f32.mrf.mxu1 }
 0x3a3   :  { %v1942_v51 = vmul.f32 %v2524_v44, %v2347_v29  ;;  %v2548_v1 = vpop.eup %2547 }
 0x3a4   :  { %v1685_v39 = vpop.f32.mrf.mxu1 }
 0x3a5   :  { %1974 = vst.msk [vmem:[%s4042_s2 + $0x8] sm:$0xff] %vm4044_vm0, %v1942_v51  ;;  %v1941_v22 = vmul.f32 %v2526_v2, %v1685_v39  ;;  %v2550_v49 = vpop.eup %2549 }
 0x3a7   :  { %1973 = vst.msk [vmem:[%s4042_s2] sm:$0xff] %vm4045_vm1, %v1941_v22  ;;  %vm4060_vm1 = vmmov %vm4044_vm0 }
 0x3a9   :  { %v1590_v23 = vpop.xlane.xlu0 %1589 }
 0x3aa   :  { %2555 = vrcp.f32 %v1590_v23 }
 0x3ab   :  { %v2350_v33 = vpop.f32.mrf.mxu1  ;;  %v2552_v10 = vpop.eup %2551 }
 0x3ac   :  { %v1944_v5 = vmul.f32 %v2528_v21, %v2350_v33 }
 0x3ad   :  { %v1695_v41 = vpop.f32.mrf.mxu1  ;;  %v1588_v17 = vpop.xlane.xlu1 %1587 }
 0x3ae   :  { %1976 = vst.msk [vmem:[%s4042_s2 + $0x18] sm:$0xff] %vm4046_vm2, %v1944_v5  ;;  %v1943_v15 = vmul.f32 %v2530_v4, %v1695_v41  ;;  %v2554_v60 = vpop.eup %2553  ;;  %2557 = vrcp.f32 %v1588_v17  ;;  %vm4061_vm2 = vmmov %vm4044_vm0 }
 0x3b0   :  { %1975 = vst.msk [vmem:[%s4042_s2 + $0x10] sm:$0xff] %vm4047_vm3, %v1943_v15  ;;  %vm4062_vm3 = vmmov %vm4044_vm0 }
 0x3b1   :  { %v2353_v20 = vpop.f32.mrf.mxu1  ;;  %v1594_v61 = vpop.xlane.xlu0 %1593 }
 0x3b2   :  { %v1946_v43 = vmul.f32 %v2532_v32, %v2353_v20  ;;  %2559 = vrcp.f32 %v1594_v61 }
 0x3b3   :  { %v1705_v11 = vpop.f32.mrf.mxu1 }
 0x3b4   :  { %1978 = vst.msk [vmem:[%s4042_s2 + $0x28] sm:$0xff] %vm4048_vm4, %v1946_v43  ;;  %v1945_v63 = vmul.f32 %v2534_v0, %v1705_v11  ;;  %vm4063_vm4 = vmmov %vm4044_vm0 }
 0x3b5   :  { %v1592_v28 = vpop.xlane.xlu1 %1591 }
 0x3b6   :  { %1977 = vst.msk [vmem:[%s4042_s2 + $0x20] sm:$0xff] %vm4049_vm5, %v1945_v63  ;;  %2561 = vrcp.f32 %v1592_v28  ;;  %vm4064_vm5 = vmmov %vm4044_vm0 }
 0x3b7   :  { %v2556_v34 = vpop.eup %2555 }
 0x3b9   :  { %v2356_v47 = vpop.f32.mrf.mxu1  ;;  %v1598_v44 = vpop.xlane.xlu0 %1597 }
 0x3ba   :  { %v1948_v27 = vmul.f32 %v2536_v58, %v2356_v47  ;;  %2563 = vrcp.f32 %v1598_v44 }
 0x3bb   :  { %v1715_v62 = vpop.f32.mrf.mxu1  ;;  %v2558_v51 = vpop.eup %2557 }
 0x3bc   :  { %1980 = vst.msk [vmem:[%s4042_s2 + $0x38] sm:$0xff] %vm4050_vm6, %v1948_v27  ;;  %v1947_v18 = vmul.f32 %v2538_v9, %v1715_v62  ;;  %vm4065_vm6 = vmmov %vm4044_vm0 }
 0x3bd   :  { %v1596_v2 = vpop.xlane.xlu1 %1595 }
 0x3be   :  { %1979 = vst.msk [vmem:[%s4042_s2 + $0x30] sm:$0xff] %vm4051_vm7, %v1947_v18  ;;  %2565 = vrcp.f32 %v1596_v2  ;;  %vm4066_vm7 = vmmov %vm4044_vm0 }
 0x3bf   :  { %v2560_v21 = vpop.eup %2559 }
 0x3c1   :  { %v2359_v42 = vpop.f32.mrf.mxu1  ;;  %v1600_v33 = vpop.xlane.xlu1 %1599 }
 0x3c2   :  { %v1950_v45 = vmul.f32 %v2540_v46, %v2359_v42 }
 0x3c3   :  { %v1725_v35 = vpop.f32.mrf.mxu1  ;;  %v2562_v4 = vpop.eup %2561 }
 0x3c4   :  { %1982 = vst.msk [vmem:[%s4042_s2 + $0x48] sm:$0xff] %vm4052_vm8, %v1950_v45  ;;  %v1949_v57 = vmul.f32 %v2542_v7, %v1725_v35  ;;  %vm4067_vm8 = vmmov %vm4044_vm0 }
 0x3c5   :  { %v1602_v54 = vpop.xlane.xlu0 %1601 }
 0x3c6   :  { %1981 = vst.msk [vmem:[%s4042_s2 + $0x40] sm:$0xff] %vm4053_vm9, %v1949_v57  ;;  %2567 = vrcp.f32 %v1602_v54  ;;  %vm4068_vm9 = vmmov %vm4044_vm0 }
 0x3c7   :  { %v2362_v13 = vpop.f32.mrf.mxu1  ;;  %2569 = vrcp.f32 %v1600_v33  ;;  %v2564_v20 = vpop.eup %2563 }
 0x3c8   :  { %v1952_v8 = vmul.f32 %v2544_v26, %v2362_v13 }
 0x3c9   :  { %v1735_v25 = vpop.f32.mrf.mxu1  ;;  %v1606_v32 = vpop.xlane.xlu0 %1605 }
 0x3ca   :  { %1984 = vst.msk [vmem:[%s4042_s2 + $0x58] sm:$0xff] %vm4054_vm10, %v1952_v8  ;;  %v1951_v3 = vmul.f32 %v2546_v14, %v1735_v25  ;;  %v1604_v37 = vpop.xlane.xlu1 %1603  ;;  %2571 = vrcp.f32 %v1606_v32  ;;  %vm4069_vm10 = vmmov %vm4044_vm0 }
 0x3cb   :  { %v2566_v36 = vpop.eup %2565  ;;  %2573 = vrcp.f32 %v1604_v37 }
 0x3cc   :  { %1983 = vst.msk [vmem:[%s4042_s2 + $0x50] sm:$0xff] %vm4055_vm11, %v1951_v3  ;;  %vm4070_vm11 = vmmov %vm4044_vm0 }
 0x3cd   :  { %v1610_v12 = vpop.xlane.xlu0 %1609 }
 0x3ce   :  { %2575 = vrcp.f32 %v1610_v12 }
 0x3cf   :  { %v2365_v59 = vpop.f32.mrf.mxu1 }
 0x3d0   :  { %v1954_v30 = vmul.f32 %v2548_v1, %v2365_v59 }
 0x3d1   :  { %v1745_v24 = vpop.f32.mrf.mxu1  ;;  %v1608_v58 = vpop.xlane.xlu1 %1607 }
 0x3d2   :  { %1986 = vst.msk [vmem:[%s4042_s2 + $0x68] sm:$0xff] %vm4056_vm12, %v1954_v30  ;;  %v1953_v50 = vmul.f32 %v2550_v49, %v1745_v24  ;;  %2577 = vrcp.f32 %v1608_v58  ;;  %vm4071_vm12 = vmmov %vm4044_vm0 }
 0x3d3   :  { %v2568_v55 = vpop.eup %2567 }
 0x3d4   :  { %1985 = vst.msk [vmem:[%s4042_s2 + $0x60] sm:$0xff] %vm4057_vm13, %v1953_v50  ;;  %v2570_v9 = vpop.eup %2569  ;;  %vm4072_vm13 = vmmov %vm4044_vm0 }
 0x3d5   :  { %v1614_v38 = vpop.xlane.xlu0 %1613 }
 0x3d6   :  { %2579 = vrcp.f32 %v1614_v38 }
 0x3d7   :  { %v2368_v31 = vpop.f32.mrf.mxu1  ;;  %v2572_v46 = vpop.eup %2571 }
 0x3d8   :  { %v1956_v56 = vmul.f32 %v2552_v10, %v2368_v31  ;;  %v2574_v7 = vpop.eup %2573 }
 0x3d9   :  { %v1755_v19 = vpop.f32.mrf.mxu1  ;;  %v1612_v42 = vpop.xlane.xlu1 %1611 }
 0x3da   :  { %1988 = vst.msk [vmem:[%s4042_s2 + $0x78] sm:$0xff] %vm4058_vm14, %v1956_v56  ;;  %v1955_v52 = vmul.f32 %v2554_v60, %v1755_v19  ;;  %2581 = vrcp.f32 %v1612_v42  ;;  %vm4073_vm14 = vmmov %vm4044_vm0 }
 0x3db   :  { %v2576_v26 = vpop.eup %2575 }
 0x3dc   :  { %1987 = vst.msk [vmem:[%s4042_s2 + $0x70] sm:$0xff] %vm4059_vm15, %v1955_v52  ;;  %vm4074_vm15 = vmmov %vm4044_vm0 }
 0x3df   :  { %v2578_v8 = vpop.eup %2577 }
 0x3e0   :  { %v1616_v3 = vpop.xlane.xlu1 %1615 }
 0x3e3   :  { %v2580_v1 = vpop.eup %2579 }
 0x3e4   :  { %v1618_v14 = vpop.xlane.xlu0 %1617 }
 0x3e5   :  { %v2403_v29 = vpop.f32.mrf.mxu0  ;;  %2583 = vrcp.f32 %v1618_v14 }
 0x3e6   :  { %v1958_v16 = vmul.f32 %v2556_v34, %v2403_v29  ;;  %2585 = vrcp.f32 %v1616_v3 }
 0x3e7   :  { %v1830_v39 = vpop.f32.mrf.mxu0  ;;  %v2582_v49 = vpop.eup %2581 }
 0x3e8   :  { %1990 = vst.msk [vmem:[%s4042_s2 + $0x88] sm:$0xff] %vm4044_vm0, %v1958_v16  ;;  %v1957_v22 = vmul.f32 %v2558_v51, %v1830_v39 }
 0x3ea   :  { %1989 = vst.msk [vmem:[%s4042_s2 + $0x80] sm:$0xff] %vm4060_vm1, %v1957_v22 }
 0x3ed   :  { %v2406_v40 = vpop.f32.mrf.mxu0 }
 0x3ee   :  { %v1960_v5 = vmul.f32 %v2560_v21, %v2406_v40 }
 0x3ef   :  { %v1840_v41 = vpop.f32.mrf.mxu0 }
 0x3f0   :  { %1992 = vst.msk [vmem:[%s4042_s2 + $0x98] sm:$0xff] %vm4061_vm2, %v1960_v5  ;;  %v1959_v15 = vmul.f32 %v2562_v4, %v1840_v41 }
 0x3f2   :  { %1991 = vst.msk [vmem:[%s4042_s2 + $0x90] sm:$0xff] %vm4062_vm3, %v1959_v15  ;;  %v2584_v23 = vpop.eup %2583 }
 0x3f3   :  { %v2586_v31 = vpop.eup %2585 }
 0x3f5   :  { %v2409_v43 = vpop.f32.mrf.mxu0 }
 0x3f6   :  { %v1962_v0 = vmul.f32 %v2564_v20, %v2409_v43 }
 0x3f7   :  { %v1850_v11 = vpop.f32.mrf.mxu0 }
 0x3f8   :  { %1994 = vst.msk [vmem:[%s4042_s2 + $0xa8] sm:$0xff] %vm4063_vm4, %v1962_v0  ;;  %v1961_v63 = vmul.f32 %v2566_v36, %v1850_v11 }
 0x3fa   :  { %1993 = vst.msk [vmem:[%s4042_s2 + $0xa0] sm:$0xff] %vm4064_vm5, %v1961_v63 }
 0x3fc   :  { %v2412_v47 = vpop.f32.mrf.mxu0 }
 0x3fd   :  { %v1964_v27 = vmul.f32 %v2568_v55, %v2412_v47 }
 0x3fe   :  { %v1860_v62 = vpop.f32.mrf.mxu0 }
 0x3ff   :  { %1996 = vst.msk [vmem:[%s4042_s2 + $0xb8] sm:$0xff] %vm4065_vm6, %v1964_v27  ;;  %v1963_v18 = vmul.f32 %v2570_v9, %v1860_v62 }
 0x401   :  { %1995 = vst.msk [vmem:[%s4042_s2 + $0xb0] sm:$0xff] %vm4066_vm7, %v1963_v18 }
 0x402   :  { %v2415_v53 = vpop.f32.mrf.mxu1 }
 0x403   :  { %v1966_v45 = vmul.f32 %v2572_v46, %v2415_v53 }
 0x404   :  { %v1870_v35 = vpop.f32.mrf.mxu1 }
 0x405   :  { %1998 = vst.msk [vmem:[%s4042_s2 + $0xc8] sm:$0xff] %vm4067_vm8, %v1966_v45  ;;  %v1965_v57 = vmul.f32 %v2574_v7, %v1870_v35 }
 0x407   :  { %1997 = vst.msk [vmem:[%s4042_s2 + $0xc0] sm:$0xff] %vm4068_vm9, %v1965_v57 }
 0x409   :  { %v2418_v6 = vpop.f32.mrf.mxu1 }
 0x40a   :  { %v1968_v13 = vmul.f32 %v2576_v26, %v2418_v6 }
 0x40b   :  { %v1880_v48 = vpop.f32.mrf.mxu1 }
 0x40c   :  { %2000 = vst.msk [vmem:[%s4042_s2 + $0xd8] sm:$0xff] %vm4069_vm10, %v1968_v13  ;;  %v1967_v25 = vmul.f32 %v2578_v8, %v1880_v48 }
 0x40e   :  { %1999 = vst.msk [vmem:[%s4042_s2 + $0xd0] sm:$0xff] %vm4070_vm11, %v1967_v25 }
 0x411   :  { %v2421_v59 = vpop.f32.mrf.mxu1 }
 0x412   :  { %v1970_v30 = vmul.f32 %v2580_v1, %v2421_v59 }
 0x413   :  { %v1890_v24 = vpop.f32.mrf.mxu1 }
 0x414   :  { %2002 = vst.msk [vmem:[%s4042_s2 + $0xe8] sm:$0xff] %vm4071_vm12, %v1970_v30  ;;  %v1969_v50 = vmul.f32 %v2582_v49, %v1890_v24 }
 0x416   :  { %2001 = vst.msk [vmem:[%s4042_s2 + $0xe0] sm:$0xff] %vm4072_vm13, %v1969_v50 }
 0x41b   :  { %v2424_v10 = vpop.f32.mrf.mxu1 }
 0x41c   :  { %v1972_v17 = vmul.f32 %v2584_v23, %v2424_v10 }
 0x41d   :  { %v1900_v56 = vpop.f32.mrf.mxu1 }
 0x41e   :  { %2004 = vst.msk [vmem:[%s4042_s2 + $0xf8] sm:$0xff] %vm4073_vm14, %v1972_v17  ;;  %v1971_v60 = vmul.f32 %v2586_v31, %v1900_v56 }
 0x420   :  { %2003 = vst.msk [vmem:[%s4042_s2 + $0xf0] sm:$0xff] %vm4074_vm15, %v1971_v60 }

</bundles_post_ra>
